<compile_context>
chip_gen: v7x
topology: tpu7x:2x2x1
jax: 0.10.0
libtpu: 0.0.40
codegen_flags: <defaults>
</compile_context>

<pallas_src>
import functools
import math

import jax
import jax.numpy as jnp
import numpy as np
from jax import lax
from jax.experimental import pallas as pl
from jax.experimental.pallas import tpu as pltpu

NEG_INF = -1e30  # mask_logits fill value


def _round_up(x, m):
    return ((x + m - 1) // m) * m


def cq_fusion_kernel(ctx_ref, qry_ref, cmask_ref, qmask_ref,
                     w4c_ref, w4q_ref, w4mlu_ref, w_ref, b_ref, out_ref,
                     *, compute_dtype):
    f32 = jnp.float32
    cd = compute_dtype

    ctx = ctx_ref[...]          # (Lc, D)  f32
    qry = qry_ref[...]          # (Lq, D)  f32
    cm = cmask_ref[...]         # (Lc, 1)  f32
    qm = qmask_ref[...]         # (1, Lq)  f32
    w4c = w4c_ref[...]          # (1, D)   f32
    w4q = w4q_ref[...]          # (1, D)   f32
    w4mlu = w4mlu_ref[...]      # (1, D)   f32

    ctx_c = ctx.astype(cd)
    qry_c = qry.astype(cd)

    # trilinear attention: score[l, j] = ctx[l].w4C + qry[j].w4Q + (ctx[l]*w4mlu).qry[j]
    # s0: VPU multiply + lane reduction (keeps the MXU free of an N=1 matmul).
    s0 = jnp.sum(ctx * w4c, axis=1, keepdims=True)                       # (Lc, 1)
    dn_nt = (((1,), (1,)), ((), ()))   # contract last dims (rhs transposed)
    # s1 is a tiny M=1 matmul; kept in f32 (negligible FLOPs, proven lowering).
    s1 = lax.dot_general(w4q, qry, dn_nt, preferred_element_type=f32)    # (1, Lq)
    s2 = lax.dot_general((ctx * w4mlu).astype(cd), qry_c, dn_nt,
                         preferred_element_type=f32)                     # (Lc, Lq)
    score = s0 + s1 + s2

    # softmax over query axis (dim=2), masked by q_mask -- f32 math, EUP recip
    sq = score + (1.0 - qm) * NEG_INF
    sq = sq - jnp.max(sq, axis=1, keepdims=True)
    eq = jnp.exp(sq)
    score_q = eq * pl.reciprocal(jnp.sum(eq, axis=1, keepdims=True), approx=True)

    # softmax over context axis (dim=1), masked by c_mask
    sc = score + (1.0 - cm) * NEG_INF
    sc = sc - jnp.max(sc, axis=0, keepdims=True)
    ec = jnp.exp(sc)
    score_c = ec * pl.reciprocal(jnp.sum(ec, axis=0, keepdims=True), approx=True)

    score_q_c = score_q.astype(cd)

    # c2q = score_q @ query
    c2q = jnp.dot(score_q_c, qry_c, preferred_element_type=f32)          # (Lc, D)

    # q2c = score_q @ (score_c^T @ ctx)   (reassociated: no (Lc, Lc) intermediate)
    a = jnp.dot(score_c.T.astype(cd), ctx_c, preferred_element_type=f32)  # (Lq, D)
    q2c = jnp.dot(score_q_c, a.astype(cd), preferred_element_type=f32)    # (Lc, D)

    # fused cqa_linear: single (Lc, 4D) @ (4D, D) MXU pass over a lane concat.
    x4 = jnp.concatenate(
        [ctx_c,
         c2q.astype(cd),
         (ctx * c2q).astype(cd),
         (ctx * q2c).astype(cd)],
        axis=1)                                                           # (Lc, 4D)
    out = jnp.dot(x4, w_ref[...], preferred_element_type=f32)             # (Lc, D)
    out = out + b_ref[...]

    out_ref[...] = (out * cm).astype(out_ref.dtype)


def cq_fusion(context, query, c_mask, q_mask, params,
              compute_dtype=jnp.bfloat16):
    B, Lc, D = context.shape
    _, Lq, _ = query.shape

    # Pad to hardware-friendly shapes (lane dims -> multiples of 128) so every
    # matmul, the score_c transpose, and the output store are lane-dense.
    Dp = _round_up(D, 128)
    Lqp = _round_up(Lq, 128)
    Lcp = _round_up(Lc, 128)

    f32 = jnp.float32
    ctx_p = jnp.zeros((B, Lcp, Dp), f32).at[:, :Lc, :D].set(context.astype(f32))
    qry_p = jnp.zeros((B, Lqp, Dp), f32).at[:, :Lq, :D].set(query.astype(f32))
    cmask_p = jnp.zeros((B, Lcp, 1), f32).at[:, :Lc, 0].set(c_mask.astype(f32))
    qmask_p = jnp.zeros((B, 1, Lqp), f32).at[:, 0, :Lq].set(q_mask.astype(f32))

    w4c_p = jnp.zeros((1, Dp), f32).at[:, :D].set(params["w4C"].reshape(1, D))
    w4q_p = jnp.zeros((1, Dp), f32).at[:, :D].set(params["w4Q"].reshape(1, D))
    w4mlu_p = jnp.zeros((1, Dp), f32).at[:, :D].set(params["w4mlu"].reshape(1, D))

    # Split the (4D, D) conv weight into its 4 row blocks and pad each to
    # (Dp, Dp) so the padded blocks line up with the padded lane concat.
    w_blocks = params["W"].reshape(4, D, D)
    w_p = jnp.zeros((4, Dp, Dp), f32).at[:, :D, :D].set(w_blocks)
    w_p = w_p.reshape(4 * Dp, Dp).astype(compute_dtype)   # MXU operand dtype
    b_p = jnp.zeros((1, Dp), f32).at[:, :D].set(params["b"].reshape(1, D))

    kernel = functools.partial(cq_fusion_kernel, compute_dtype=compute_dtype)

    out_p = pl.pallas_call(
        kernel,
        out_shape=jax.ShapeDtypeStruct((B, Lcp, Dp), f32),
        grid=(B,),
        in_specs=[
            pl.BlockSpec((pl.Squeezed(), Lcp, Dp), lambda i: (i, 0, 0)),
            pl.BlockSpec((pl.Squeezed(), Lqp, Dp), lambda i: (i, 0, 0)),
            pl.BlockSpec((pl.Squeezed(), Lcp, 1), lambda i: (i, 0, 0)),
            pl.BlockSpec((pl.Squeezed(), 1, Lqp), lambda i: (i, 0, 0)),
            pl.BlockSpec((1, Dp), lambda i: (0, 0)),
            pl.BlockSpec((1, Dp), lambda i: (0, 0)),
            pl.BlockSpec((1, Dp), lambda i: (0, 0)),
            pl.BlockSpec((4 * Dp, Dp), lambda i: (0, 0)),
            pl.BlockSpec((1, Dp), lambda i: (0, 0)),
        ],
        out_specs=pl.BlockSpec((pl.Squeezed(), Lcp, Dp), lambda i: (i, 0, 0)),
        compiler_params=pltpu.CompilerParams(
            dimension_semantics=("parallel",)),
    )(ctx_p, qry_p, cmask_p, qmask_p, w4c_p, w4q_p, w4mlu_p, w_p, b_p)

    return out_p[:, :Lc, :D]


def reference(context, query, c_mask, q_mask, params):
    """Pure-JAX f32 reference mirroring the PyTorch forward (drop_rate=0)."""
    B, Lc, D = context.shape
    _, Lq, _ = query.shape
    w4C = params["w4C"].reshape(D, 1)
    w4Q = params["w4Q"].reshape(D, 1)
    w4mlu = params["w4mlu"].reshape(1, 1, D)
    s0 = context @ w4C                                  # (B, Lc, 1)
    s1 = jnp.swapaxes(query @ w4Q, 1, 2)                # (B, 1, Lq)
    s2 = jnp.einsum("bld,bjd->blj", context * w4mlu, query)
    score = s0 + s1 + s2
    qm = q_mask.astype(jnp.float32)[:, None, :]
    cm = c_mask.astype(jnp.float32)[:, :, None]
    score_q = jax.nn.softmax(score + (1.0 - qm) * NEG_INF, axis=2)
    score_c = jax.nn.softmax(score + (1.0 - cm) * NEG_INF, axis=1)
    score_t = jnp.swapaxes(score_c, 1, 2)
    c2q = score_q @ query
    q2c = (score_q @ score_t) @ context
    x4 = jnp.concatenate([context, c2q, context * c2q, context * q2c], axis=2)
    out = x4 @ params["W"] + params["b"].reshape(1, 1, D)
    return out * cm


def init_params(key, D):
    k1, k2, k3, k4, k5 = jax.random.split(key, 5)
    b_w4 = math.sqrt(6.0 / (D + 1))       # xavier_uniform for (D, 1)
    b_mlu = math.sqrt(6.0 / (2 * D))      # xavier_uniform for (1, 1, D)
    b_conv = 1.0 / math.sqrt(4 * D)       # conv1d default-style bound
    return {
        "w4C": jax.random.uniform(k1, (D, 1), jnp.float32, -b_w4, b_w4),
        "w4Q": jax.random.uniform(k2, (D, 1), jnp.float32, -b_w4, b_w4),
        "w4mlu": jax.random.uniform(k3, (1, 1, D), jnp.float32, -b_mlu, b_mlu),
        "W": jax.random.uniform(k4, (4 * D, D), jnp.float32, -b_conv, b_conv),
        "b": jax.random.uniform(k5, (D,), jnp.float32, -b_conv, b_conv),
    }


if __name__ == "__main__":
    B, Lc, Lq, D = 2, 16, 8, 32
    key = jax.random.PRNGKey(0)
    kc, kq, kp = jax.random.split(key, 3)

    context = jax.random.normal(kc, (B, Lc, D), jnp.float32)
    query = jax.random.normal(kq, (B, Lq, D), jnp.float32)

    # boolean-style 0/1 masks built from per-example lengths
    c_lens = jnp.array([16, 12], dtype=jnp.int32)
    q_lens = jnp.array([8, 5], dtype=jnp.int32)
    c_mask = (jnp.arange(Lc)[None, :] < c_lens[:, None]).astype(jnp.float32)
    q_mask = (jnp.arange(Lq)[None, :] < q_lens[:, None]).astype(jnp.float32)

    params = init_params(kp, D)

    ref = jax.block_until_ready(reference(context, query, c_mask, q_mask, params))

    # f32-compute path: tight check of the padded / reassociated / fused algorithm.
    out_f32 = jax.block_until_ready(
        cq_fusion(context, query, c_mask, q_mask, params,
                  compute_dtype=jnp.float32))
    np.testing.assert_allclose(np.asarray(out_f32), np.asarray(ref),
                               rtol=2e-3, atol=2e-3)

    # bf16 MXU path (default fast path): loose tolerance covers bf16 operand
    # rounding through the softmax; algorithmic correctness is pinned by the
    # f32 check above.
    out_bf16 = jax.block_until_ready(
        cq_fusion(context, query, c_mask, q_mask, params,
                  compute_dtype=jnp.bfloat16))
    np.testing.assert_allclose(np.asarray(out_bf16), np.asarray(ref),
                               rtol=1e-1, atol=1e-1)

    print("KERNEL_OK")
</pallas_src>

<mosaic_0001>
module attributes {stable_mosaic.version = 11 : i64} {
  func.func @cq_fusion_kernel(%arg0: i32, %arg1: memref<1x128x128xf32, #tpu.memory_space<vmem>>, %arg2: memref<1x128x128xf32, #tpu.memory_space<vmem>>, %arg3: memref<1x128x1xf32, #tpu.memory_space<vmem>>, %arg4: memref<1x1x128xf32, #tpu.memory_space<vmem>>, %arg5: memref<1x128xf32, #tpu.memory_space<vmem>>, %arg6: memref<1x128xf32, #tpu.memory_space<vmem>>, %arg7: memref<1x128xf32, #tpu.memory_space<vmem>>, %arg8: memref<512x128xf32, #tpu.memory_space<vmem>>, %arg9: memref<1x128xf32, #tpu.memory_space<vmem>>, %arg10: memref<1x128x128xf32, #tpu.memory_space<vmem>>) attributes {dimension_semantics = [#tpu.dimension_semantics<parallel>], iteration_bounds = array<i64: 2>, scalar_prefetch = 0 : i64, scratch_operands = 0 : i64, tpu.core_type = #tpu.core_type<tc>, window_params = [{transform_indices = @transform_0, window_bounds = array<i64: 1, 128, 128>}, {transform_indices = @transform_1, window_bounds = array<i64: 1, 128, 128>}, {transform_indices = @transform_2, window_bounds = array<i64: 1, 128, 1>}, {transform_indices = @transform_3, window_bounds = array<i64: 1, 1, 128>}, {pipeline_mode = #tpu.pipeline_mode<synchronous>, transform_indices = @transform_4, window_bounds = array<i64: 1, 128>}, {pipeline_mode = #tpu.pipeline_mode<synchronous>, transform_indices = @transform_5, window_bounds = array<i64: 1, 128>}, {pipeline_mode = #tpu.pipeline_mode<synchronous>, transform_indices = @transform_6, window_bounds = array<i64: 1, 128>}, {pipeline_mode = #tpu.pipeline_mode<synchronous>, transform_indices = @transform_7, window_bounds = array<i64: 512, 128>}, {pipeline_mode = #tpu.pipeline_mode<synchronous>, transform_indices = @transform_8, window_bounds = array<i64: 1, 128>}, {transform_indices = @transform_9, window_bounds = array<i64: 1, 128, 128>}]} {
    %c0 = arith.constant 0 : index
    %c0_0 = arith.constant 0 : index
    %c0_1 = arith.constant 0 : index
    %0 = vector.load %arg1[%c0, %c0_0, %c0_1] : memref<1x128x128xf32, #tpu.memory_space<vmem>>, vector<1x128x128xf32>
    %1 = vector.shape_cast %0 : vector<1x128x128xf32> to vector<128x128xf32>
    %c0_2 = arith.constant 0 : index
    %c0_3 = arith.constant 0 : index
    %c0_4 = arith.constant 0 : index
    %2 = vector.load %arg2[%c0_2, %c0_3, %c0_4] : memref<1x128x128xf32, #tpu.memory_space<vmem>>, vector<1x128x128xf32>
    %3 = vector.shape_cast %2 : vector<1x128x128xf32> to vector<128x128xf32>
    %c0_5 = arith.constant 0 : index
    %c0_6 = arith.constant 0 : index
    %c0_7 = arith.constant 0 : index
    %4 = vector.load %arg3[%c0_5, %c0_6, %c0_7] : memref<1x128x1xf32, #tpu.memory_space<vmem>>, vector<1x128x1xf32>
    %5 = vector.shape_cast %4 : vector<1x128x1xf32> to vector<128x1xf32>
    %c0_8 = arith.constant 0 : index
    %c0_9 = arith.constant 0 : index
    %c0_10 = arith.constant 0 : index
    %6 = vector.load %arg4[%c0_8, %c0_9, %c0_10] : memref<1x1x128xf32, #tpu.memory_space<vmem>>, vector<1x1x128xf32>
    %7 = vector.shape_cast %6 : vector<1x1x128xf32> to vector<1x128xf32>
    %c0_11 = arith.constant 0 : index
    %c0_12 = arith.constant 0 : index
    %8 = vector.load %arg5[%c0_11, %c0_12] : memref<1x128xf32, #tpu.memory_space<vmem>>, vector<1x128xf32>
    %c0_13 = arith.constant 0 : index
    %c0_14 = arith.constant 0 : index
    %9 = vector.load %arg6[%c0_13, %c0_14] : memref<1x128xf32, #tpu.memory_space<vmem>>, vector<1x128xf32>
    %c0_15 = arith.constant 0 : index
    %c0_16 = arith.constant 0 : index
    %10 = vector.load %arg7[%c0_15, %c0_16] : memref<1x128xf32, #tpu.memory_space<vmem>>, vector<1x128xf32>
    %11 = vector.broadcast %8 : vector<1x128xf32> to vector<128x128xf32>
    %12 = arith.mulf %1, %11 : vector<128x128xf32>
    %cst = arith.constant dense<0.000000e+00> : vector<128xf32>
    %13 = vector.multi_reduction <add>, %12, %cst [1] : vector<128x128xf32> to vector<128xf32>
    %14 = vector.shape_cast %13 : vector<128xf32> to vector<128x1xf32>
    %cst_17 = arith.constant dense<0.000000e+00> : vector<1x128xf32>
    %15 = tpu.matmul %9, %3, %cst_17 {dimension_numbers = #tpu.dot_dimension_numbers<[1], [1], [0], [0], [0, 0, 1, 0], [], []>} : vector<1x128xf32>, vector<128x128xf32>, vector<1x128xf32> -> vector<1x128xf32>
    %16 = vector.broadcast %10 : vector<1x128xf32> to vector<128x128xf32>
    %17 = arith.mulf %1, %16 : vector<128x128xf32>
    %cst_18 = arith.constant dense<0.000000e+00> : vector<128x128xf32>
    %18 = tpu.matmul %17, %3, %cst_18 {dimension_numbers = #tpu.dot_dimension_numbers<[1], [1], [0], [0], [0, 0, 1, 0], [], []>} : vector<128x128xf32>, vector<128x128xf32>, vector<128x128xf32> -> vector<128x128xf32>
    %19 = vector.broadcast %14 : vector<128x1xf32> to vector<128x128xf32>
    %20 = vector.broadcast %15 : vector<1x128xf32> to vector<128x128xf32>
    %21 = arith.addf %19, %20 : vector<128x128xf32>
    %22 = arith.addf %21, %18 : vector<128x128xf32>
    %cst_19 = arith.constant 1.000000e+00 : f32
    %23 = vector.broadcast %cst_19 : f32 to vector<1x128xf32>
    %24 = arith.subf %23, %7 : vector<1x128xf32>
    %cst_20 = arith.constant -1.000000e+30 : f32
    %25 = vector.broadcast %cst_20 : f32 to vector<1x128xf32>
    %26 = arith.mulf %24, %25 : vector<1x128xf32>
    %27 = vector.broadcast %26 : vector<1x128xf32> to vector<128x128xf32>
    %28 = arith.addf %22, %27 : vector<128x128xf32>
    %cst_21 = arith.constant dense<0xFF800000> : vector<128xf32>
    %29 = vector.multi_reduction <maximumf>, %28, %cst_21 [1] : vector<128x128xf32> to vector<128xf32>
    %30 = vector.shape_cast %29 : vector<128xf32> to vector<128x1xf32>
    %31 = vector.broadcast %30 : vector<128x1xf32> to vector<128x128xf32>
    %32 = arith.subf %28, %31 : vector<128x128xf32>
    %33 = math.exp %32 : vector<128x128xf32>
    %cst_22 = arith.constant dense<0.000000e+00> : vector<128xf32>
    %34 = vector.multi_reduction <add>, %33, %cst_22 [1] : vector<128x128xf32> to vector<128xf32>
    %35 = vector.shape_cast %34 : vector<128xf32> to vector<128x1xf32>
    %36 = tpu.reciprocal %35 {approx = true} : vector<128x1xf32> -> vector<128x1xf32>
    %37 = vector.broadcast %36 : vector<128x1xf32> to vector<128x128xf32>
    %38 = arith.mulf %33, %37 : vector<128x128xf32>
    %cst_23 = arith.constant 1.000000e+00 : f32
    %39 = vector.broadcast %cst_23 : f32 to vector<128x1xf32>
    %40 = arith.subf %39, %5 : vector<128x1xf32>
    %cst_24 = arith.constant -1.000000e+30 : f32
    %41 = vector.broadcast %cst_24 : f32 to vector<128x1xf32>
    %42 = arith.mulf %40, %41 : vector<128x1xf32>
    %43 = vector.broadcast %42 : vector<128x1xf32> to vector<128x128xf32>
    %44 = arith.addf %22, %43 : vector<128x128xf32>
    %cst_25 = arith.constant dense<0xFF800000> : vector<128xf32>
    %45 = vector.multi_reduction <maximumf>, %44, %cst_25 [0] : vector<128x128xf32> to vector<128xf32>
    %46 = vector.shape_cast %45 : vector<128xf32> to vector<1x128xf32>
    %47 = vector.broadcast %46 : vector<1x128xf32> to vector<128x128xf32>
    %48 = arith.subf %44, %47 : vector<128x128xf32>
    %49 = math.exp %48 : vector<128x128xf32>
    %cst_26 = arith.constant dense<0.000000e+00> : vector<128xf32>
    %50 = vector.multi_reduction <add>, %49, %cst_26 [0] : vector<128x128xf32> to vector<128xf32>
    %51 = vector.shape_cast %50 : vector<128xf32> to vector<1x128xf32>
    %52 = tpu.reciprocal %51 {approx = true} : vector<1x128xf32> -> vector<1x128xf32>
    %53 = vector.broadcast %52 : vector<1x128xf32> to vector<128x128xf32>
    %54 = arith.mulf %49, %53 : vector<128x128xf32>
    %cst_27 = arith.constant dense<0.000000e+00> : vector<128x128xf32>
    %55 = tpu.matmul %38, %3, %cst_27 {dimension_numbers = #tpu.dot_dimension_numbers<[1], [0], [0], [1], [0, 0, 1, 1], [], []>} : vector<128x128xf32>, vector<128x128xf32>, vector<128x128xf32> -> vector<128x128xf32>
    %56 = tpu.transpose %54, [1, 0] : vector<128x128xf32> -> vector<128x128xf32>
    %cst_28 = arith.constant dense<0.000000e+00> : vector<128x128xf32>
    %57 = tpu.matmul %56, %1, %cst_28 {dimension_numbers = #tpu.dot_dimension_numbers<[1], [0], [0], [1], [0, 0, 1, 1], [], []>} : vector<128x128xf32>, vector<128x128xf32>, vector<128x128xf32> -> vector<128x128xf32>
    %cst_29 = arith.constant dense<0.000000e+00> : vector<128x128xf32>
    %58 = tpu.matmul %38, %57, %cst_29 {dimension_numbers = #tpu.dot_dimension_numbers<[1], [0], [0], [1], [0, 0, 1, 1], [], []>} : vector<128x128xf32>, vector<128x128xf32>, vector<128x128xf32> -> vector<128x128xf32>
    %59 = arith.mulf %1, %55 : vector<128x128xf32>
    %60 = arith.mulf %1, %58 : vector<128x128xf32>
    %61 = tpu.concatenate %1, %55, %59, %60 in 1 : vector<128x128xf32>, vector<128x128xf32>, vector<128x128xf32>, vector<128x128xf32> -> vector<128x512xf32>
    %c0_30 = arith.constant 0 : index
    %c0_31 = arith.constant 0 : index
    %62 = vector.load %arg8[%c0_30, %c0_31] : memref<512x128xf32, #tpu.memory_space<vmem>>, vector<512x128xf32>
    %cst_32 = arith.constant dense<0.000000e+00> : vector<128x128xf32>
    %63 = tpu.matmul %61, %62, %cst_32 {dimension_numbers = #tpu.dot_dimension_numbers<[1], [0], [0], [1], [0, 0, 1, 1], [], []>} : vector<128x512xf32>, vector<512x128xf32>, vector<128x128xf32> -> vector<128x128xf32>
    %c0_33 = arith.constant 0 : index
    %c0_34 = arith.constant 0 : index
    %64 = vector.load %arg9[%c0_33, %c0_34] : memref<1x128xf32, #tpu.memory_space<vmem>>, vector<1x128xf32>
    %65 = vector.broadcast %64 : vector<1x128xf32> to vector<128x128xf32>
    %66 = arith.addf %63, %65 : vector<128x128xf32>
    %67 = vector.broadcast %5 : vector<128x1xf32> to vector<128x128xf32>
    %68 = arith.mulf %66, %67 : vector<128x128xf32>
    %c0_35 = arith.constant 0 : index
    %c0_36 = arith.constant 0 : index
    %c0_37 = arith.constant 0 : index
    %69 = vector.load %arg10[%c0_35, %c0_36, %c0_37] : memref<1x128x128xf32, #tpu.memory_space<vmem>>, vector<1x128x128xf32>
    %70 = vector.shape_cast %69 : vector<1x128x128xf32> to vector<128x128xf32>
    %71 = vector.shape_cast %68 : vector<128x128xf32> to vector<1x128x128xf32>
    tpu.vector_store %arg10[%c0_35, %c0_36, %c0_37], %71 {strides = array<i32>} : memref<1x128x128xf32, #tpu.memory_space<vmem>>, vector<1x128x128xf32>,
    return
  }
  func.func @transform_0(%arg0: i32) -> (i32, i32, i32) {
    %c0_i32 = arith.constant 0 : i32
    %c0_i32_0 = arith.constant 0 : i32
    %c0_i32_1 = arith.constant 0 : i32
    return %arg0, %c0_i32, %c0_i32_0 : i32, i32, i32
  }
  func.func @transform_1(%arg0: i32) -> (i32, i32, i32) {
    %c0_i32 = arith.constant 0 : i32
    %c0_i32_0 = arith.constant 0 : i32
    %c0_i32_1 = arith.constant 0 : i32
    return %arg0, %c0_i32, %c0_i32_0 : i32, i32, i32
  }
  func.func @transform_2(%arg0: i32) -> (i32, i32, i32) {
    %c0_i32 = arith.constant 0 : i32
    %c0_i32_0 = arith.constant 0 : i32
    %c0_i32_1 = arith.constant 0 : i32
    return %arg0, %c0_i32, %c0_i32_0 : i32, i32, i32
  }
  func.func @transform_3(%arg0: i32) -> (i32, i32, i32) {
    %c0_i32 = arith.constant 0 : i32
    %c0_i32_0 = arith.constant 0 : i32
    %c0_i32_1 = arith.constant 0 : i32
    return %arg0, %c0_i32, %c0_i32_0 : i32, i32, i32
  }
  func.func @transform_4(%arg0: i32) -> (i32, i32) {
    %c0_i32 = arith.constant 0 : i32
    %c0_i32_0 = arith.constant 0 : i32
    %c0_i32_1 = arith.constant 0 : i32
    return %c0_i32, %c0_i32_0 : i32, i32
  }
  func.func @transform_5(%arg0: i32) -> (i32, i32) {
    %c0_i32 = arith.constant 0 : i32
    %c0_i32_0 = arith.constant 0 : i32
    %c0_i32_1 = arith.constant 0 : i32
    return %c0_i32, %c0_i32_0 : i32, i32
  }
  func.func @transform_6(%arg0: i32) -> (i32, i32) {
    %c0_i32 = arith.constant 0 : i32
    %c0_i32_0 = arith.constant 0 : i32
    %c0_i32_1 = arith.constant 0 : i32
    return %c0_i32, %c0_i32_0 : i32, i32
  }
  func.func @transform_7(%arg0: i32) -> (i32, i32) {
    %c0_i32 = arith.constant 0 : i32
    %c0_i32_0 = arith.constant 0 : i32
    %c0_i32_1 = arith.constant 0 : i32
    return %c0_i32, %c0_i32_0 : i32, i32
  }
  func.func @transform_8(%arg0: i32) -> (i32, i32) {
    %c0_i32 = arith.constant 0 : i32
    %c0_i32_0 = arith.constant 0 : i32
    %c0_i32_1 = arith.constant 0 : i32
    return %c0_i32, %c0_i32_0 : i32, i32
  }
  func.func @transform_9(%arg0: i32) -> (i32, i32, i32) {
    %c0_i32 = arith.constant 0 : i32
    %c0_i32_0 = arith.constant 0 : i32
    %c0_i32_1 = arith.constant 0 : i32
    return %arg0, %c0_i32, %c0_i32_0 : i32, i32, i32
  }
}

</mosaic_0001>

<bundles_post_ra>
// kernel: tpu_custom_call.1
= control target key start
LH: loop header
LB: loop body
LE: loop exit
PB: predicated region body
PF: predicated region fallthrough
CT: control target
= control target key end

     0   :  { %14 = vsyncpa [#allocation3], 0  ;;  %s4647_s0 = inlined_call_operand.vmem [shape: f32[2,128,128], index: 0, kind: input, shape index: {}]   ;;  %s4648_s1 = inlined_call_operand.hbm [shape: f32[2,128,128], index: 1, kind: input, shape index: {}]   ;;  %s4649_s2 = inlined_call_operand.vmem [shape: f32[2,128,1], index: 2, kind: input, shape index: {}]   ;;  %s4650_s3 = inlined_call_operand.vmem [shape: f32[2,1,128], index: 3, kind: input, shape index: {}]   ;;  %s4651_s4 = inlined_call_operand.vmem [shape: f32[1,128], index: 4, kind: input, shape index: {}]   ;;  %s4652_s5 = inlined_call_operand.vmem [shape: f32[1,128], index: 5, kind: input, shape index: {}]   ;;  %s4653_s6 = inlined_call_operand.vmem [shape: f32[1,128], index: 6, kind: input, shape index: {}]   ;;  %s4654_s7 = inlined_call_operand.hbm [shape: f32[512,128], index: 7, kind: input, shape index: {}]   ;;  %s4655_s8 = inlined_call_operand.vmem [shape: f32[1,128], index: 8, kind: input, shape index: {}]   ;;  %s4656_s9 = inlined_call_operand.hbm [shape: f32[2,128,128], index: 9, kind: output, shape index: {}]  }
   0x1   :  { %16 = vsyncpa [#allocation3 + $0x1], 0 }
   0x2   :  { %17 = vsyncpa [#allocation6], 0 }
   0x3   :  { %18 = vsyncpa [#allocation4], 0 }
   0x4   :  { %20 = vsyncpa [#allocation4 + $0x1], 0  ;;  %s3503_s30 = smov 0   ;;  %s3505_s10 = smov 0  }
   0x5   :  { %s3507_s11 = smov 0   ;;  %s3509_s12 = smov 0  }
   0x6 LB: > { %s3524_s13 = sadd.s32 4294967295, %s3440_s12   ;;  %s2304_s14 = sadd.s32 4294967294, %s3440_s12   ;;  %s3440_s12 = sphi %s3509_s12, %s4723_s12   ;;  %s3436_s11 = sphi %s3507_s11, %s4726_s11   ;;  %s3432_s10 = sphi %s3505_s10, %s4725_s10   ;;  %s3428_s30 = sphi %s3503_s30, %s4724_s30  }
   0x7   : > { %p72_p0 = scmp.ne.s32.totalorder %s3432_s10, %s3428_s30  ;;  %p4657_p1 = scmp.eq.s32.totalorder %s3524_s13, 0 }
   0x8   : > { %p259_p3 = scmp.eq.s32.totalorder %s2304_s14, 1  ;;  %p2305_p5 = scmp.ge.s32.totalorder %s3440_s12, 1 }
   0x9   : > { %p3533_p4 = por %p4657_p1, %p72_p0  ;;  %p266_p7 = scmp.lt.s32.totalorder %s3440_s12, 3 }
   0xa   : > { %p3538_p6 = por %p259_p3, %p72_p0  ;;  %s3442_s18 = smov [#allocation5]  }
   0xb   : > { %s4678_s15 = scalar_select %p3533_p4, 1, 0 }
   0xc   : > { %s4679_s16 = scalar_select %p3538_p6, 1, 0 }
   0xd   : > { %p3543_p8 = pnand %p2305_p5, %p266_p7  ;;  %s287_s19 = sshll.u32 %s3442_s18, 4  ;;  %s3547_s19 = int_to_ptr.vmem [resolvable:$true] %s287_s19 }
   0xe   : > { %4680 = sst [smem:[#allocation11_spill]] %s4679_s16  ;;  %s3559_s21 = sadd.s32 1, %s3440_s12  }
   0xf   : > { %s4681_s17 = scalar_select %p3543_p8, 1, 0 }
  0x10   : > { %p3135_p9 = pneg %p3543_p8  ;;  %4683 = sst [smem:[#allocation12_spill]] %s3559_s21 }
  0x11   : > { %s59_s22 = sadd.s32 1, %s3436_s11  ;;  %s56_s23 = ssub.s32 %s3440_s12, %s3559_s21 }
  0x12   : > { %p3554_p11 = pnand %p3135_p9, %p4657_p1  ;;  %s3312_s26 = scalar_lea.hbm %s4654_s7, 8192 }
  0x13   : > { %p3313_p12 = scmp.ne.s32.totalorder %s4654_s7, %s3312_s26  ;;  %p3319_p5 = scmp.lt.u32.totalorder %s3312_s26, %s4654_s7 }
  0x14   : > { %p3314_p13 = pneg %p3554_p11 }
  0x16   : > { %p3315_p0 = pnand %p3314_p13, %p3313_p12 }
  0x18   : > { %p3316_p3 = pneg %p3315_p0 }
  0x1a   : > { %p3321_p7 = pnand %p3319_p5, %p3316_p3 }
  0x1c   : > { %3324 = shalt.err (!%p3321_p7)
}
  0x1d   : > { %s3325_s18 = scalar_lea.vmem %s3547_s19, 8192  ;;  %p3333_p2 = scmp.lt.s32.totalorder %s3547_s19, %s3547_s19 }
  0x1e   : > { %p3326_p9 = scmp.ne.s32.totalorder %s3547_s19, %s3325_s18  ;;  %p3334_p6 = scmp.lt.s32.totalorder %s3325_s18, %s3325_s18 }
  0x20   : > { %p3328_p10 = pnand %p3326_p9, %p3314_p13  ;;  %p3335_p4 = por %p3334_p6, %p3333_p2 }
  0x22   : > { %p3329_p1 = pneg %p3328_p10 }
  0x24   : > { %p3336_p8 = pnand %p3335_p4, %p3329_p1 }
  0x26   : > { %3339 = shalt.err (!%p3336_p8)
}
  0x27   : > { %s4663_s24 = smov 128   ;;  %s3444_s25 = smov 8  }
  0x28   : > { %3138 = dma.hbm_to_vmem [thread:$0]  (!%p3554_p11), %s4654_s7, 8192, %s3547_s19, [#allocation6], %s4663_s24, %s4663_s24, %s3444_s25  }
  0x29   : > { %p57_p1 = scmp.eq.s32.totalorder %s56_s23, 0  ;;  %p66_p2 = scmp.ne.s32.totalorder %s3436_s11, %s3432_s10 }
  0x2a   : > { %p67_p4 = scmp.eq.s32.totalorder %s3440_s12, 0  ;;  %p3148_p6 = scmp.lt.s32.totalorder %s3440_s12, 2 }
  0x2b   : > { %s3593_s28 = scalar_select %p57_p1, %s3436_s11, %s59_s22  }
  0x2c   : > { %p68_p8 = por %p67_p4, %p66_p2  ;;  %p4684_p10 = scmp.eq.s32.totalorder %s3524_s13, 1 }
  0x2d   : > { %s312_s20 = sand.u32 1, %s3436_s11   ;;  %s2327_s14 = sshll.u32 %s3440_s12, 11 }
  0x2e   : > { %p3597_p12 = por %p4684_p10, %p66_p2  ;;  %s2308_s18 = sshll.u32 %s312_s20, 7 }
  0x2f   : > { %s3606_s26 = scalar_lea.hbm %s4648_s1, %s2327_s14  ;;  %s316_s19 = scalar_lea.vmem [#allocation2], %s2308_s18 }
  0x30   : > { %s323_s22 = sshll.u32 %s316_s19, 4  ;;  %p3608_p11 = pnand %p3148_p6, %p68_p8  ;;  %s3612_s22 = int_to_ptr.vmem [resolvable:$true] %s323_s22 }
  0x31   : > { %s3614_s27 = scalar_lea.sflag [#allocation3], %s312_s20  ;;  %s3340_s24 = scalar_lea.hbm %s3606_s26, 2048 }
  0x32   : > { %p3341_p13 = scmp.ne.s32.totalorder %s3606_s26, %s3340_s24  ;;  %p3342_p0 = pneg %p3608_p11 }
  0x33   : > { %s3345_s14 = scalar_lea.hbm %s4648_s1, 4096  ;;  %p3346_p7 = scmp.lt.u32.totalorder %s3606_s26, %s4648_s1 }
  0x34   : > { %p3343_p3 = pnand %p3342_p0, %p3341_p13  ;;  %p3347_p9 = scmp.lt.u32.totalorder %s3345_s14, %s3340_s24 }
  0x35   : > { %p3349_p2 = scmp.lt.u32.totalorder %s3340_s24, %s3606_s26 }
  0x36   : > { %p3344_p5 = pneg %p3343_p3  ;;  %p3348_p1 = por %p3347_p9, %p3346_p7 }
  0x38   : > { %p3350_p4 = por %p3349_p2, %p3348_p1 }
  0x3a   : > { %p3351_p6 = pnand %p3350_p4, %p3344_p5 }
  0x3c   : > { %3354 = shalt.err (!%p3351_p6)
}
  0x3d   : > { %s3355_s20 = scalar_lea.vmem %s3612_s22, 2048  ;;  %s3445_s16 = smov [#allocation2]  }
  0x3e   : > { %p3356_p8 = scmp.ne.s32.totalorder %s3612_s22, %s3355_s20  ;;  %s3360_s21 = sshll.u32 %s3445_s16, 4  ;;  %s3361_s21 = int_to_ptr.vmem [resolvable:$false] %s3360_s21 }
  0x3f   : > { %s3362_s18 = scalar_lea.vmem %s3361_s21, 4096  ;;  %p3363_p3 = scmp.lt.s32.totalorder %s3612_s22, %s3361_s21 }
  0x40   : > { %p3358_p10 = pnand %p3356_p8, %p3342_p0  ;;  %p3364_p7 = scmp.lt.s32.totalorder %s3362_s18, %s3355_s20 }
  0x42   : > { %p3359_p13 = pneg %p3358_p10  ;;  %p3365_p9 = por %p3364_p7, %p3363_p3 }
  0x44   : > { %p3366_p1 = pnand %p3365_p9, %p3359_p13 }
  0x46   : > { %3369 = shalt.err (!%p3366_p1)
}
  0x47   : > { %s4687_s24 = smov 128   ;;  %p4688_p0 = scmp.ne.s32.totalorder %s4681_s17, 0 }
  0x48   : > { %3142 = dma.hbm_to_vmem [thread:$0]  (!%p3608_p11), %s3606_s26, 2048, %s3612_s22, %s3614_s27, %s4687_s24, %s4687_s24, %s3444_s25  }
  0x49   : > { %349 = sbr.rel (%p4688_p0) target bundleno = 1393 (0x571), region = 56 }
  0x50   : > { %s3648_s14 = sand.u32 1, %s3432_s10   ;;  %p4689_p5 = scmp.ne.s32.totalorder %s4678_s15, 0 }
  0x51   : > { %s2312_s19 = sshll.u32 %s3648_s14, 7  ;;  %s352_s20 = scalar_lea.sflag [#allocation3], %s3648_s14 }
  0x52   : > { %s3654_s23 = scalar_lea.vmem [#allocation2], %s2312_s19 }
  0x53   : > { %3415 = dma.done.wait (%p4689_p5), %s352_s20, 2048  }
  0x54   : > { %3417 = vsyncadd (%p4689_p5), %s352_s20, 4294965248  ;;  %p4690_p11 = scmp.eq.s32.totalorder %s3524_s13, 0 }
  0x56   : > { %3419 = dma.done.wait (%p4690_p11), [#allocation6], 8192   ;;  %p4691_p2 = pmov %p4690_p11 }
  0x57   : > { %p407_p4 = scmp.lt.s32.totalorder %s3524_s13, 1  ;;  %v3446_v0 = vmov 0.0|0.0   ;;  %vm3447_vm0 = vmmov 0   ;;  %v3448_v1 = vmov 0.0   ;;  %v3449_v2 = vmov 0   ;;  %v436_v3 = vld [vmem:[%s3654_s23] sm:$0xff] }
  0x58   : > { %3421 = vsyncadd (%p4691_p2), [#allocation6], 4294959104  ;;  %2895 = vmatprep.subr.bf16.mxu0 %v3446_v0  ;;  %2668 = vmatprep.mubr.msk.f32.mxu0 %vm3447_vm0, %v3448_v1  ;;  %v437_v4 = vld [vmem:[%s3654_s23 + $0x8] sm:$0xff]  ;;  %v438_v5 = vld [vmem:[%s3654_s23 + $0x10] sm:$0xff]  ;;  %s4538_s21 = scalar_lea.vmem [#allocation7], %s2312_s19  ;;  %s2330_s19 = sshll.u32 %s3524_s13, 11 }
  0x59   : > { %s3667_s15 = scalar_select %p407_p4, %s3524_s13, 1  ;;  %3193 = vset.pattern.permute.xlu1 %v3449_v2  ;;  %3192 = vset.pattern.permute.xlu0 %v3449_v2  ;;  %v3673_v6 = vpack.c.bf16 %v437_v4, %v436_v3  ;;  %v439_v7 = vld [vmem:[%s3654_s23 + $0x18] sm:$0xff]  ;;  %v3696_v10 = vld [vmem:[%s4651_s4] ss:$0 sm:$0xff]  ;;  %v441_v12 = vld [vmem:[%s3654_s23 + $0x28] sm:$0xff] }
  0x5a   : > { %v3683_v8 = vpack.c.bf16 %v439_v7, %v438_v5  ;;  %v440_v11 = vld [vmem:[%s3654_s23 + $0x20] sm:$0xff]  ;;  %v442_v22 = vld [vmem:[%s3654_s23 + $0x30] sm:$0xff]  ;;  %v443_v23 = vld [vmem:[%s3654_s23 + $0x38] sm:$0xff]  ;;  %s2188_s18 = sshll.u32 %s4538_s21, 4  ;;  %s3450_s13 = smov [#allocation7]   ;;  %s4601_s18 = int_to_ptr.vmem [resolvable:$true] %s2188_s18 }
  0x5b   : > { %s2328_s17 = sshll.u32 %s3667_s15, 7  ;;  %2897 = vmatpush3.bf16.xpose.msra.mxu0 %v3673_v6  ;;  %2920 = vmatprep.subr.bf16.mxu1 %v3673_v6  ;;  %v3711_v16 = vld [vmem:[%s4653_s6] ss:$0 sm:$0xff]  ;;  %v3715_v18 = vpack.c.bf16 %v441_v12, %v440_v11  ;;  %v3735_v26 = vpack.c.bf16 %v443_v23, %v442_v22  ;;  %v445_v34 = vld [vmem:[%s3654_s23 + $0x48] sm:$0xff]  ;;  %v446_v44 = vld [vmem:[%s3654_s23 + $0x50] sm:$0xff]  ;;  %s419_s16 = scalar_lea.vmem %s4650_s3, %s3667_s15 }
  0x5c   : > { %s3681_s22 = scalar_lea.vmem %s4647_s0, %s2328_s17  ;;  %2922 = vmatpush3.bf16.xpose.msra.mxu1 %v3673_v6  ;;  %2898 = vmatprep.subr.bf16.mxu0 %v3446_v0  ;;  %v444_v33 = vld [vmem:[%s3654_s23 + $0x40] sm:$0xff]  ;;  %v447_v45 = vld [vmem:[%s3654_s23 + $0x58] sm:$0xff]  ;;  %v449_v54 = vld [vmem:[%s3654_s23 + $0x68] sm:$0xff]  ;;  %s3816_s25 = scalar_lea.vmem %s4649_s2, %s2328_s17 }
  0x5d   : > { %v3690_v9 = vld [vmem:[%s3681_s22 + $0x10] sm:$0xff]  ;;  %2924 = vmatprep.subr.bf16.mxu1 %v3683_v8  ;;  %v3703_v14 = vld [vmem:[%s3681_s22 + $0x18] sm:$0xff]  ;;  %v3706_v15 = vld [vmem:[%s3681_s22] sm:$0xff]  ;;  %v3763_v37 = vpack.c.bf16 %v445_v34, %v444_v33  ;;  %v3791_v48 = vpack.c.bf16 %v447_v45, %v446_v44  ;;  %s3370_s17 = scalar_lea.vmem %s4601_s18, 2048  ;;  %s3374_s26 = sshll.u32 %s3450_s13, 4  ;;  %s3375_s26 = int_to_ptr.vmem [resolvable:$false] %s3374_s26 }
  0x5e   : > { %v480_v13 = vmul.f32 %v3696_v10, %v3690_v9  ;;  %v602_v17 = vmul.f32 %v3711_v16, %v3706_v15  ;;  %v481_v19 = vmul.f32 %v3696_v10, %v3703_v14  ;;  %v3720_v20 = vld [vmem:[%s3681_s22 + $0x28] sm:$0xff]  ;;  %v3731_v24 = vld [vmem:[%s3681_s22 + $0x38] sm:$0xff]  ;;  %v478_v25 = vmul.f32 %v3696_v10, %v3706_v15  ;;  %v3754_v32 = vld [vmem:[%s3681_s22 + $0x20] sm:$0xff]  ;;  %p3371_p6 = scmp.ne.s32.totalorder %s4601_s18, %s3370_s17  ;;  %s3376_s27 = scalar_lea.vmem %s3375_s26, 4096 }
  0x5f   : > { %v483_v21 = vmul.f32 %v3696_v10, %v3720_v20  ;;  %v3738_v27 = vld [vmem:[%s3681_s22 + $0x8] sm:$0xff]  ;;  %v485_v28 = vmul.f32 %v3696_v10, %v3731_v24  ;;  %v3759_v35 = vld [vmem:[%s3681_s22 + $0x58] sm:$0xff]  ;;  %v482_v36 = vmul.f32 %v3696_v10, %v3754_v32  ;;  %v3768_v39 = vld [vmem:[%s3681_s22 + $0x30] sm:$0xff]  ;;  %v606_v44 = vmul.f32 %v3711_v16, %v3754_v32  ;;  %p3377_p13 = scmp.lt.s32.totalorder %s4601_s18, %s3375_s26  ;;  %p3378_p3 = scmp.lt.s32.totalorder %s3376_s27, %s3370_s17 }
  0x60   : > { %498 = vadd.xlane.f32.xlu1 %v480_v13  ;;  %2703 = vmatprep.mubr.f32.mxu1 %v602_v17  ;;  %v3743_v29 = vld [vmem:[%s3681_s22 + $0x48] sm:$0xff]  ;;  %v479_v30 = vmul.f32 %v3696_v10, %v3738_v27  ;;  %v489_v38 = vmul.f32 %v3696_v10, %v3759_v35  ;;  %v484_v41 = vmul.f32 %v3696_v10, %v3768_v39  ;;  %v3782_v43 = vld [vmem:[%s3681_s22 + $0x40] sm:$0xff]  ;;  %v3787_v46 = vld [vmem:[%s3681_s22 + $0x78] sm:$0xff]  ;;  %p3372_p8 = pnand %p3371_p6, %p3597_p12 }
  0x61   : > { %494 = vadd.xlane.f32.xlu0 %v478_v25  ;;  %v487_v31 = vmul.f32 %v3696_v10, %v3743_v29  ;;  %v3771_v40 = vld [vmem:[%s3681_s22 + $0x68] sm:$0xff]  ;;  %v486_v47 = vmul.f32 %v3696_v10, %v3782_v43  ;;  %v493_v49 = vmul.f32 %v3696_v10, %v3787_v46  ;;  %v3796_v50 = vld [vmem:[%s3681_s22 + $0x50] sm:$0xff]  ;;  %v3805_v52 = vld [vmem:[%s3681_s22 + $0x60] sm:$0xff]  ;;  %v603_v25 = vmul.f32 %v3711_v16, %v3738_v27  ;;  %p3379_p7 = por %p3378_p3, %p3377_p13 }
  0x62   : > { %v491_v42 = vmul.f32 %v3696_v10, %v3771_v40  ;;  %v488_v51 = vmul.f32 %v3696_v10, %v3796_v50  ;;  %v448_v53 = vld [vmem:[%s3654_s23 + $0x60] sm:$0xff]  ;;  %v490_v55 = vmul.f32 %v3696_v10, %v3805_v52  ;;  %v3821_v57 = vld [vmem:[%s3681_s22 + $0x70] sm:$0xff]  ;;  %v453_v59 = vld [vmem:[%s3816_s25 + $0x8] sm:$0xff]  ;;  %p3373_p10 = pneg %p3372_p8 }
  0x63   : > { %2900 = vmatpush3.bf16.xpose.msra.mxu0 %v3683_v8  ;;  %v3818_v56 = vpack.c.bf16 %v449_v54, %v448_v53  ;;  %v492_v58 = vmul.f32 %v3696_v10, %v3821_v57  ;;  %v450_v60 = vld [vmem:[%s3654_s23 + $0x70] sm:$0xff]  ;;  %v451_v61 = vld [vmem:[%s3654_s23 + $0x78] sm:$0xff]  ;;  %v968_v62 = vsub.f32 1.0, %v453_v59  ;;  %v456_v10 = vld [vmem:[%s3816_s25 + $0x20] sm:$0xff]  ;;  %s2175_s23 = scalar_lea.sflag [#allocation4], %s3648_s14 }
  0x64   : > { %2926 = vmatpush3.bf16.xpose.msra.mxu1 %v3683_v8  ;;  %2901 = vmatprep.subr.bf16.mxu0 %v3446_v0  ;;  %v454_v63 = vld [vmem:[%s3816_s25 + $0x10] sm:$0xff]  ;;  %v3833_v1 = vpack.c.bf16 %v451_v61, %v450_v60  ;;  %v455_v4 = vld [vmem:[%s3816_s25 + $0x18] sm:$0xff]  ;;  %v3842_v11 = vld [vmem:[%s3816_s25] sm:$0xff]  ;;  %v971_v13 = vsub.f32 1.0, %v456_v10  ;;  %v611_v10 = vmul.f32 %v3711_v16, %v3743_v29  ;;  %p3380_p9 = pnand %p3379_p7, %p3373_p10 }
  0x65   : > { %2928 = vmatprep.subr.bf16.mxu1 %v3715_v18  ;;  %500 = vadd.xlane.f32.xlu1 %v481_v19  ;;  %v984_v2 = vmul.f32 -1e+30, %v968_v62  ;;  %v969_v3 = vsub.f32 1.0, %v454_v63  ;;  %v970_v7 = vsub.f32 1.0, %v455_v4  ;;  %4692 = vst [vmem:[#allocation13_spill] sm:$0xff] %v3842_v11  ;;  %v3846_v17 = vld [vmem:[%s3816_s25 + $0x28] sm:$0xff] }
  0x66   : > { %496 = vadd.xlane.f32.xlu0 %v479_v30  ;;  %4693 = vst [vmem:[#allocation14_spill] sm:$0xff] %v3846_v17  ;;  %v3852_v19 = vld [vmem:[%s3816_s25 + $0x48] sm:$0xff]  ;;  %v972_v22 = vsub.f32 1.0, %v3846_v17  ;;  %v470_v23 = vld [vmem:[%s4652_s5] sm:$0x1]  ;;  %v604_v30 = vmul.f32 %v3711_v16, %v3690_v9  ;;  %v3867_v34 = vld [vmem:[%s3816_s25 + $0x58] sm:$0xff] }
  0x67   : > { %v985_v5 = vmul.f32 -1e+30, %v969_v3  ;;  %v986_v12 = vmul.f32 -1e+30, %v970_v7  ;;  %4694 = vst [vmem:[#allocation15_spill] sm:$0xff] %v3852_v19  ;;  %v976_v33 = vsub.f32 1.0, %v3852_v19 }
  0x68   : > { %4696 = vst [vmem:[#allocation17_spill] sm:$0xff] %v3867_v34  ;;  %v3887_v54 = vld [vmem:[%s3816_s25 + $0x40] sm:$0xff]  ;;  %v3894_v60 = vld [vmem:[%s3816_s25 + $0x78] sm:$0xff]  ;;  %v3901_v63 = vld [vmem:[%s3816_s25 + $0x50] sm:$0xff] }
  0x69   : > { %504 = vadd.xlane.f32.xlu1 %v483_v21  ;;  %v987_v21 = vmul.f32 -1e+30, %v971_v13  ;;  %v992_v45 = vmul.f32 -1e+30, %v976_v33  ;;  %4699 = vst [vmem:[#allocation20_spill] sm:$0xff] %v3887_v54  ;;  %4700 = vst [vmem:[#allocation21_spill] sm:$0xff] %v3894_v60 }
  0x6a   : > { %502 = vadd.xlane.f32.xlu0 %v482_v36  ;;  %v988_v36 = vmul.f32 -1e+30, %v972_v22  ;;  %v975_v62 = vsub.f32 1.0, %v3887_v54  ;;  %4701 = vst [vmem:[#allocation22_spill] sm:$0xff] %v3901_v63  ;;  %v982_v4 = vsub.f32 1.0, %v3894_v60  ;;  %v977_v7 = vsub.f32 1.0, %v3901_v63 }
  0x6b   : > { %2903 = vmatpush3.bf16.xpose.msra.mxu0 %v3715_v18  ;;  %v613_v22 = vmul.f32 %v3711_v16, %v3759_v35 }
  0x6c   : > { %2930 = vmatpush3.bf16.xpose.msra.mxu1 %v3715_v18  ;;  %2904 = vmatprep.subr.bf16.mxu0 %v3446_v0  ;;  %v998_v13 = vmul.f32 -1e+30, %v982_v4 }
  0x6d   : > { %2932 = vmatprep.subr.bf16.mxu1 %v3735_v26  ;;  %508 = vadd.xlane.f32.xlu1 %v485_v28  ;;  %v3861_v28 = vld [vmem:[%s3816_s25 + $0x30] sm:$0xff] }
  0x6e   : > { %506 = vadd.xlane.f32.xlu0 %v484_v41  ;;  %4695 = vst [vmem:[#allocation16_spill] sm:$0xff] %v3861_v28  ;;  %v605_v41 = vmul.f32 %v3711_v16, %v3703_v14 }
  0x71   : > { %512 = vadd.xlane.f32.xlu1 %v487_v31 }
  0x72   : > { %510 = vadd.xlane.f32.xlu0 %v486_v47  ;;  %v978_v47 = vsub.f32 1.0, %v3867_v34 }
  0x73   : > { %2906 = vmatpush3.bf16.xpose.msra.mxu0 %v3735_v26 }
  0x74   : > { %2934 = vmatpush3.bf16.xpose.msra.mxu1 %v3735_v26  ;;  %2907 = vmatprep.subr.bf16.mxu0 %v3446_v0 }
  0x75   : > { %2936 = vmatprep.subr.bf16.mxu1 %v3763_v37  ;;  %516 = vadd.xlane.f32.xlu1 %v489_v38  ;;  %v973_v38 = vsub.f32 1.0, %v3861_v28 }
  0x76   : > { %514 = vadd.xlane.f32.xlu0 %v488_v51 }
  0x77   : > { %v989_v51 = vmul.f32 -1e+30, %v973_v38 }
  0x79   : > { %520 = vadd.xlane.f32.xlu1 %v491_v42  ;;  %v3873_v42 = vld [vmem:[%s3816_s25 + $0x38] sm:$0xff] }
  0x7a   : > { %518 = vadd.xlane.f32.xlu0 %v490_v55  ;;  %4697 = vst [vmem:[#allocation18_spill] sm:$0xff] %v3873_v42  ;;  %v974_v53 = vsub.f32 1.0, %v3873_v42  ;;  %v608_v55 = vmul.f32 %v3711_v16, %v3768_v39 }
  0x7b   : > { %2909 = vmatpush3.bf16.xpose.msra.mxu0 %v3763_v37 }
  0x7c   : > { %2938 = vmatpush3.bf16.xpose.msra.mxu1 %v3763_v37  ;;  %2910 = vmatprep.subr.bf16.mxu0 %v3446_v0  ;;  %v990_v61 = vmul.f32 -1e+30, %v974_v53 }
  0x7d   : > { %2940 = vmatprep.subr.bf16.mxu1 %v3791_v48  ;;  %524 = vadd.xlane.f32.xlu1 %v493_v49  ;;  %v3880_v49 = vld [vmem:[%s3816_s25 + $0x68] sm:$0xff] }
  0x7e   : > { %522 = vadd.xlane.f32.xlu0 %v492_v58  ;;  %4698 = vst [vmem:[#allocation19_spill] sm:$0xff] %v3880_v49  ;;  %v994_v58 = vmul.f32 -1e+30, %v978_v47  ;;  %v980_v59 = vsub.f32 1.0, %v3880_v49 }
  0x80   : > { %v996_v3 = vmul.f32 -1e+30, %v980_v59 }
  0x83   : > { %2912 = vmatpush3.bf16.xpose.msra.mxu0 %v3791_v48 }
  0x84   : > { %2942 = vmatpush3.bf16.xpose.msra.mxu1 %v3791_v48  ;;  %2913 = vmatprep.subr.bf16.mxu0 %v3446_v0 }
  0x85   : > { %2944 = vmatprep.subr.bf16.mxu1 %v3818_v56 }
  0x8b   : > { %2915 = vmatpush3.bf16.xpose.msra.mxu0 %v3818_v56 }
  0x8c   : > { %2946 = vmatpush3.bf16.xpose.msra.mxu1 %v3818_v56  ;;  %2916 = vmatprep.subr.bf16.mxu0 %v3446_v0  ;;  %v967_v0 = vsub.f32 1.0, %v3842_v11 }
  0x8d   : > { %2948 = vmatprep.subr.bf16.mxu1 %v3833_v1 }
  0x8e   : > { %1006 = vperm.xlu1 %3193, %v984_v2   ;;  %v983_v31 = vmul.f32 -1e+30, %v967_v0  ;;  %v610_v2 = vmul.f32 %v3711_v16, %v3782_v43  ;;  %v993_v0 = vmul.f32 -1e+30, %v977_v7 }
  0x92   : > { %1011 = vperm.xlu1 %3193, %v985_v5   ;;  %v991_v5 = vmul.f32 -1e+30, %v975_v62 }
  0x93   : > { %2918 = vmatpush3.bf16.xpose.msra.mxu0 %v3833_v1 }
  0x94   : > { %2950 = vmatpush3.bf16.xpose.msra.mxu1 %v3833_v1  ;;  %2952 = vmatprep.subr.bf16.mxu0 %v3673_v6 }
  0x95   : > { %1001 = vperm.xlu0 %3192, %v983_v31   ;;  %v615_v31 = vmul.f32 %v3711_v16, %v3771_v40 }
  0x96   : > { %1016 = vperm.xlu1 %3193, %v986_v12   ;;  %v612_v12 = vmul.f32 %v3711_v16, %v3796_v50 }
  0x99   : > { %1046 = vperm.xlu0 %3192, %v992_v45  }
  0x9a   : > { %2669 = vmatmul.mubr.f32.vlgmr.msra.gmra.mrb[0].mxu0 %v470_v23  ;;  %1021 = vperm.xlu1 %3193, %v987_v21   ;;  %v3922_v23 = vld [vmem:[%s3816_s25 + $0x70] sm:$0xff] }
  0x9b   : > { %2704 = vmatmul.mubr.f32.vlgmr.msra.gmra.mrb[0].mxu1 %v603_v25  ;;  %2954 = vmatpush3.bf16.msra.mxu0 %v3673_v6  ;;  %v607_v6 = vmul.f32 %v3711_v16, %v3720_v20  ;;  %4703 = vst [vmem:[#allocation24_spill] sm:$0xff] %v3922_v23 }
  0x9c   : > { %2706 = vmatprep.mubr.f32.mxu1 %v604_v30  ;;  %2956 = vmatprep.subr.bf16.mxu0 %v3683_v8  ;;  %v981_v30 = vsub.f32 1.0, %v3922_v23 }
  0x9d   : > { %1056 = vperm.xlu0 %3192, %v994_v58  }
  0x9e   : > { %1026 = vperm.xlu1 %3193, %v988_v36   ;;  %v997_v33 = vmul.f32 -1e+30, %v981_v30  ;;  %v617_v36 = vmul.f32 %v3711_v16, %v3787_v46 }
  0x9f   : > { %2707 = vmatmul.mubr.f32.gmra.mrb[2].mxu1 %v605_v41  ;;  %2958 = vmatpush3.bf16.msra.mxu0 %v3683_v8  ;;  %v609_v8 = vmul.f32 %v3711_v16, %v3731_v24 }
  0xa0   : > { %2709 = vmatprep.mubr.f32.mxu1 %v606_v44  ;;  %2960 = vmatprep.subr.bf16.mxu0 %v3715_v18 }
  0xa1   : > { %1066 = vperm.xlu0 %3192, %v996_v3   ;;  %v468_v3 = vld [vmem:[%s419_s16] sm:$0x1] }
  0xa2   : > { %1031 = vperm.xlu1 %3193, %v989_v51   ;;  %v799_v7 = vsub.f32 1.0, %v468_v3 }
  0xa3   : > { %2710 = vmatmul.mubr.f32.gmra.mrb[4].mxu1 %v607_v6  ;;  %2962 = vmatpush3.bf16.msra.mxu0 %v3715_v18  ;;  %v3912_v18 = vld [vmem:[%s3816_s25 + $0x60] sm:$0xff] }
  0xa4   : > { %2712 = vmatprep.mubr.f32.mxu1 %v608_v55  ;;  %2964 = vmatprep.subr.bf16.mxu0 %v3735_v26  ;;  %4702 = vst [vmem:[#allocation23_spill] sm:$0xff] %v3912_v18  ;;  %v979_v21 = vsub.f32 1.0, %v3912_v18 }
  0xa5   : > { %1076 = vperm.xlu0 %3192, %v998_v13   ;;  %v800_v13 = vmul.f32 -1e+30, %v799_v7 }
  0xa6   : > { %1036 = vperm.xlu1 %3193, %v990_v61   ;;  %v995_v25 = vmul.f32 -1e+30, %v979_v21 }
  0xa7   : > { %2713 = vmatmul.mubr.f32.gmra.mrb[6].mxu1 %v609_v8  ;;  %2966 = vmatpush3.bf16.msra.mxu0 %v3735_v26  ;;  %v614_v26 = vmul.f32 %v3711_v16, %v3805_v52  ;;  %v763_v8 = vlaneseq }
  0xa8   : > { %2715 = vmatprep.mubr.f32.mxu1 %v610_v2  ;;  %2968 = vmatprep.subr.bf16.mxu0 %v3763_v37 }
  0xa9   : > { %v764_v4 = vshrl.u32 %v763_v8, 7 }
  0xaa   : > { %1041 = vperm.xlu1 %3193, %v991_v5  }
  0xab   : > { %2716 = vmatmul.mubr.f32.gmra.mrb[8].mxu1 %v611_v10  ;;  %2970 = vmatpush3.bf16.msra.mxu0 %v3763_v37  ;;  %v616_v37 = vmul.f32 %v3711_v16, %v3821_v57 }
  0xac   : > { %2718 = vmatprep.mubr.f32.mxu1 %v612_v12  ;;  %2972 = vmatprep.subr.bf16.mxu0 %v3791_v48  ;;  %v765_v12 = vsub.s32 0, %v764_v4 }
  0xae   : > { %1051 = vperm.xlu1 %3193, %v993_v0  }
  0xaf   : > { %2719 = vmatmul.mubr.f32.gmra.mrb[10].mxu1 %v613_v22  ;;  %2974 = vmatpush3.bf16.msra.mxu0 %v3791_v48 }
  0xb0   : > { %2721 = vmatprep.mubr.f32.mxu1 %v614_v26  ;;  %2976 = vmatprep.subr.bf16.mxu0 %v3818_v56 }
  0xb2   : > { %1061 = vperm.xlu1 %3193, %v995_v25  }
  0xb3   : > { %2722 = vmatmul.mubr.f32.gmra.mrb[12].mxu1 %v615_v31  ;;  %2978 = vmatpush3.bf16.msra.mxu0 %v3818_v56 }
  0xb4   : > { %2724 = vmatprep.mubr.f32.mxu1 %v616_v37  ;;  %2980 = vmatprep.subr.bf16.mxu0 %v3833_v1  ;;  %v3964_v37 = vrot.slane %v800_v13, %v765_v12 }
  0xb6   : > { %1071 = vperm.xlu1 %3193, %v997_v33  }
  0xb7   : > { %2725 = vmatmul.mubr.f32.gmra.mrb[14].mxu1 %v617_v36  ;;  %2982 = vmatpush3.bf16.msra.mxu0 %v3833_v1 }
  0xed   : > { %v499_v48 = vpop.xlane.xlu1 %498 }
  0xee   : > { %v495_v51 = vpop.xlane.xlu0 %494 }
  0xf2   : > { %v501_v38 = vpop.xlane.xlu1 %500 }
  0xf3   : > { %v497_v56 = vpop.xlane.xlu0 %496 }
  0xf6   : > { %v505_v41 = vpop.xlane.xlu1 %504 }
  0xf7   : > { %v503_v6 = vpop.xlane.xlu0 %502 }
  0xfa   : > { %v509_v44 = vpop.xlane.xlu1 %508 }
  0xfb   : > { %v507_v58 = vpop.xlane.xlu0 %506 }
  0xfe   : > { %v3940_v45 = vpop.xlane.xlu1 %512 }
  0xff   : > { %v3950_v1 = vpop.xlane.xlu0 %510 }
 0x102   : > { %v3942_v47 = vpop.xlane.xlu1 %516 }
 0x103   : > { %v3952_v62 = vpop.xlane.xlu0 %514 }
 0x106   : > { %v3944_v16 = vpop.xlane.xlu1 %520 }
 0x107   : > { %v3958_v5 = vpop.xlane.xlu0 %518 }
 0x10a   : > { %v3946_v53 = vpop.xlane.xlu1 %524 }
 0x10b   : > { %v3960_v0 = vpop.xlane.xlu0 %522 }
 0x10e   : > { %v1007_v55 = vpop.permute.xlu1 %1006 }
 0x112   : > { %v3948_v59 = vpop.permute.xlu1 %1011 }
 0x114   : > { %v1002_v60 = vpop.permute.xlu0 %1001 }
 0x116   : > { %v1017_v61 = vpop.permute.xlu1 %1016 }
 0x118   : > { %v1047_v49 = vpop.permute.xlu0 %1046 }
 0x11a   : > { %v1022_v2 = vpop.permute.xlu1 %1021 }
 0x11e   : > { %v1027_v10 = vpop.permute.xlu1 %1026 }
 0x122   : > { %v1032_v30 = vpop.permute.xlu1 %1031 }
 0x16d   : > { %v592_v21 = vpop.f32.mrb[0].mxu0 }
 0x16e   : > { %v3962_v22 = vrot.slane %v592_v21, %v765_v12  ;;  %v2705_v26 = vpop.f32.mrb[0].mxu1  ;;  %v2670_v25 = vpop.f32.mrb[1].mxu0 }
 0x16f   : > { %v684_v31 = vpop.f32.mrb[1].mxu1  ;;  %v1037_v12 = vpop.permute.xlu1 %1036 }
 0x170   : > { %v768_v33 = vadd.f32 %v3962_v22, %v497_v56  ;;  %v767_v36 = vadd.f32 %v3962_v22, %v495_v51  ;;  %v770_v8 = vadd.f32 %v3962_v22, %v501_v38  ;;  %v769_v23 = vadd.f32 %v3962_v22, %v499_v48 }
 0x171   : > { %v772_v13 = vadd.f32 %v3962_v22, %v505_v41  ;;  %v771_v48 = vadd.f32 %v3962_v22, %v503_v6 }
 0x172   : > { %v784_v3 = vadd.f32 %v2705_v26, %v768_v33  ;;  %v783_v4 = vadd.f32 %v767_v36, %v684_v31  ;;  %v2708_v7 = vpop.f32.mrb[2].mxu1 }
 0x173   : > { %v786_v18 = vadd.f32 %v2708_v7, %v770_v8  ;;  %v694_v21 = vpop.f32.mrb[3].mxu1  ;;  %v774_v8 = vadd.f32 %v3962_v22, %v509_v44 }
 0x174   : > { %v785_v63 = vadd.f32 %v769_v23, %v694_v21  ;;  %v3971_v25 = vadd.f32 %v3964_v37, %v783_v4  ;;  %v3975_v56 = vadd.f32 %v3964_v37, %v784_v3  ;;  %v3985_v36 = vadd.f32 %v1007_v55, %v784_v3 }
 0x175   : > { %v3978_v38 = vadd.f32 %v3964_v37, %v786_v18  ;;  %v3993_v21 = vadd.f32 %v1002_v60, %v783_v4 }
 0x176   : > { %v2711_v51 = vpop.f32.mrb[4].mxu1  ;;  %823 = vmax.xlane.f32.xlu0 %v3971_v25  ;;  %v3983_v26 = vadd.f32 %v3964_v37, %v785_v63 }
 0x177   : > { %v788_v23 = vadd.f32 %v2711_v51, %v772_v13  ;;  %v704_v31 = vpop.f32.mrb[5].mxu1  ;;  %v773_v13 = vadd.f32 %v3962_v22, %v507_v58  ;;  %v776_v58 = vadd.f32 %v3962_v22, %v3940_v45 }
 0x178   : > { %4704 = vst [vmem:[#allocation25_spill] sm:$0xff] %v3983_v26  ;;  %v787_v33 = vadd.f32 %v771_v48, %v704_v31  ;;  %v4016_v31 = vadd.f32 %v3948_v59, %v785_v63 }
 0x179   : > { %v3987_v41 = vadd.f32 %v1027_v10, %v788_v23  ;;  %v3991_v7 = vadd.f32 %v3964_v37, %v788_v23  ;;  %v1042_v10 = vpop.permute.xlu1 %1041 }
 0x17a   : > { %v3995_v54 = vadd.f32 %v1022_v2, %v787_v33  ;;  %v2714_v6 = vpop.f32.mrb[6].mxu1  ;;  %825 = vmax.xlane.f32.xlu0 %v3975_v56  ;;  %v4000_v55 = vadd.f32 %v3964_v37, %v787_v33  ;;  %v4006_v2 = vadd.f32 %v1017_v61, %v786_v18  ;;  %v775_v18 = vadd.f32 %v3962_v22, %v3950_v1 }
 0x17b   : > { %4705 = vst [vmem:[#allocation26_spill] sm:$0xff] %v3991_v7  ;;  %v1096_v44 = vmax.f32 %v3985_v36, %v3987_v41  ;;  %v790_v3 = vadd.f32 %v2714_v6, %v774_v8  ;;  %v714_v51 = vpop.f32.mrb[7].mxu1 }
 0x17c   : > { %v1095_v60 = vmax.f32 %v3993_v21, %v3995_v54  ;;  %v789_v4 = vadd.f32 %v773_v13, %v714_v51  ;;  %v1057_v13 = vpop.permute.xlu0 %1056  ;;  %v778_v51 = vadd.f32 %v3962_v22, %v3942_v47 }
 0x17d   : > { %v4008_v48 = vadd.f32 %v1037_v12, %v790_v3  ;;  %v4013_v23 = vadd.f32 %v3964_v37, %v790_v3 }
 0x17e   : > { %v4018_v33 = vadd.f32 %v1032_v30, %v789_v4  ;;  %v2717_v8 = vpop.f32.mrb[8].mxu1  ;;  %827 = vmax.xlane.f32.xlu0 %v3983_v26  ;;  %v4024_v61 = vadd.f32 %v3964_v37, %v789_v4  ;;  %v1052_v30 = vpop.permute.xlu1 %1051 }
 0x17f   : > { %v1098_v45 = vmax.f32 %v4006_v2, %v4008_v48  ;;  %v792_v12 = vadd.f32 %v2717_v8, %v776_v58  ;;  %v724_v6 = vpop.f32.mrb[9].mxu1  ;;  %v777_v58 = vadd.f32 %v3962_v22, %v3952_v62 }
 0x180   : > { %v1097_v63 = vmax.f32 %v4016_v31, %v4018_v33  ;;  %v791_v59 = vadd.f32 %v775_v18, %v724_v6  ;;  %v1067_v42 = vpop.permute.xlu0 %1066 }
 0x181   : > { %v4030_v3 = vadd.f32 %v1047_v49, %v792_v12  ;;  %v4035_v1 = vadd.f32 %v3964_v37, %v792_v12 }
 0x182   : > { %v4037_v4 = vadd.f32 %v1042_v10, %v791_v59  ;;  %v2720_v34 = vpop.f32.mrb[10].mxu1  ;;  %829 = vmax.xlane.f32.xlu0 %v3978_v38  ;;  %v4043_v8 = vadd.f32 %v3964_v37, %v791_v59  ;;  %v780_v10 = vadd.f32 %v3962_v22, %v3944_v16 }
 0x183   : > { %v1100_v49 = vmax.f32 %v1096_v44, %v4030_v3  ;;  %v794_v18 = vadd.f32 %v2720_v34, %v778_v51  ;;  %v734_v6 = vpop.f32.mrb[11].mxu1  ;;  %v779_v34 = vadd.f32 %v3962_v22, %v3958_v5 }
 0x184   : > { %v1099_v47 = vmax.f32 %v1095_v60, %v4037_v4  ;;  %v793_v28 = vadd.f32 %v777_v58, %v734_v6  ;;  %v1062_v60 = vpop.permute.xlu1 %1061 }
 0x185   : > { %v4047_v12 = vadd.f32 %v1057_v13, %v794_v18  ;;  %v4052_v19 = vadd.f32 %v3964_v37, %v794_v18 }
 0x186   : > { %v4054_v62 = vadd.f32 %v1052_v30, %v793_v28  ;;  %v2723_v59 = vpop.f32.mrb[12].mxu1  ;;  %831 = vmax.xlane.f32.xlu0 %v4000_v55  ;;  %v4060_v44 = vadd.f32 %v3964_v37, %v793_v28  ;;  %v782_v30 = vadd.f32 %v3962_v22, %v3946_v53 }
 0x187   : > { %v1102_v13 = vmax.f32 %v1098_v45, %v4047_v12  ;;  %v796_v51 = vadd.f32 %v2723_v59, %v780_v10  ;;  %v744_v16 = vpop.f32.mrb[13].mxu1  ;;  %v781_v45 = vadd.f32 %v3962_v22, %v3960_v0 }
 0x188   : > { %v1101_v58 = vmax.f32 %v1097_v63, %v4054_v62  ;;  %v795_v18 = vadd.f32 %v779_v34, %v744_v16  ;;  %v1077_v34 = vpop.permute.xlu0 %1076  ;;  %v1072_v16 = vpop.permute.xlu1 %1071 }
 0x189   : > { %v4064_v6 = vadd.f32 %v1067_v42, %v796_v51  ;;  %v4069_v17 = vadd.f32 %v3964_v37, %v796_v51 }
 0x18a   : > { %v4071_v5 = vadd.f32 %v1062_v60, %v795_v18  ;;  %v2726_v28 = vpop.f32.mrb[14].mxu1  ;;  %833 = vmax.xlane.f32.xlu0 %v3991_v7  ;;  %v4077_v10 = vadd.f32 %v3964_v37, %v795_v18 }
 0x18b   : > { %v1104_v42 = vmax.f32 %v1100_v49, %v4064_v6  ;;  %v798_v63 = vadd.f32 %v2726_v28, %v782_v30  ;;  %v754_v59 = vpop.f32.mrb[15].mxu1 }
 0x18c   : > { %v1103_v53 = vmax.f32 %v1099_v47, %v4071_v5  ;;  %v797_v51 = vadd.f32 %v781_v45, %v754_v59 }
 0x18d   : > { %v4081_v60 = vadd.f32 %v1077_v34, %v798_v63  ;;  %v4084_v11 = vadd.f32 %v3964_v37, %v798_v63 }
 0x18e   : > { %v1107_v26 = vmax.f32 %v1103_v53, %v1104_v42  ;;  %v4086_v7 = vadd.f32 %v1072_v16, %v797_v51  ;;  %835 = vmax.xlane.f32.xlu0 %v4024_v61  ;;  %v4090_v0 = vadd.f32 %v3964_v37, %v797_v51 }
 0x18f   : > { %v1106_v22 = vmax.f32 %v1102_v13, %v4081_v60 }
 0x190   : > { %v1105_v49 = vmax.f32 %v1101_v58, %v4086_v7 }
 0x192   : > { %v1108_v47 = vmax.f32 %v1105_v49, %v1106_v22  ;;  %837 = vmax.xlane.f32.xlu0 %v4013_v23 }
 0x194   : > { %v1109_v18 = vmax.f32 %v1107_v26, %v1108_v47 }
 0x196   : > { %v1110_v30 = vrot.slane %v1109_v18, 4  ;;  %839 = vmax.xlane.f32.xlu0 %v4043_v8 }
 0x198   : > { %v1111_v28 = vmax.f32 %v1109_v18, %v1110_v30 }
 0x19a   : > { %v1112_v45 = vrot.slane %v1111_v28, 2  ;;  %841 = vmax.xlane.f32.xlu0 %v4035_v1 }
 0x19c   : > { %v1113_v42 = vmax.f32 %v1111_v28, %v1112_v45 }
 0x19e   : > { %v1114_v63 = vrot.slane %v1113_v42, 1  ;;  %843 = vmax.xlane.f32.xlu0 %v4060_v44 }
 0x1a0   : > { %v4098_v37 = vmax.f32 %v1113_v42, %v1114_v63 }
 0x1a2   : > { %v1130_v13 = vsub.f32 %v4086_v7, %v4098_v37  ;;  %845 = vmax.xlane.f32.xlu0 %v4052_v19  ;;  %v1116_v26 = vsub.f32 %v3993_v21, %v4098_v37  ;;  %v1117_v58 = vsub.f32 %v3985_v36, %v4098_v37  ;;  %v1118_v59 = vsub.f32 %v4016_v31, %v4098_v37 }
 0x1a3   : > { %v1119_v34 = vsub.f32 %v4006_v2, %v4098_v37  ;;  %v1120_v53 = vsub.f32 %v3995_v54, %v4098_v37  ;;  %v1121_v7 = vsub.f32 %v3987_v41, %v4098_v37  ;;  %v1122_v51 = vsub.f32 %v4018_v33, %v4098_v37 }
 0x1a4   : > { %v1123_v21 = vsub.f32 %v4008_v48, %v4098_v37  ;;  %v1124_v36 = vsub.f32 %v4037_v4, %v4098_v37  ;;  %v1125_v31 = vsub.f32 %v4030_v3, %v4098_v37  ;;  %v1126_v2 = vsub.f32 %v4054_v62, %v4098_v37 }
 0x1a5   : > { %v1127_v54 = vsub.f32 %v4047_v12, %v4098_v37  ;;  %v1128_v41 = vsub.f32 %v4071_v5, %v4098_v37  ;;  %v1129_v33 = vsub.f32 %v4064_v6, %v4098_v37  ;;  %v1131_v48 = vsub.f32 %v4081_v60, %v4098_v37 }
 0x1a6   : > { %847 = vmax.xlane.f32.xlu0 %v4077_v10  ;;  %v1132_v4 = vmul.f32 1.442695, %v1116_v26  ;;  %v1134_v16 = vmul.f32 1.442695, %v1117_v58  ;;  %v1136_v3 = vmul.f32 1.442695, %v1118_v59 }
 0x1a7   : > { %v1138_v62 = vmul.f32 1.442695, %v1119_v34  ;;  %v1140_v12 = vmul.f32 1.442695, %v1120_v53  ;;  %v1142_v5 = vmul.f32 1.442695, %v1121_v7 }
 0x1a8   : > { %3194 = vpow2.f32 %v1132_v4  ;;  %v1144_v6 = vmul.f32 1.442695, %v1122_v51  ;;  %v1146_v22 = vmul.f32 1.442695, %v1123_v21  ;;  %v1148_v47 = vmul.f32 1.442695, %v1124_v36 }
 0x1a9   : > { %3196 = vpow2.f32 %v1134_v16  ;;  %v1150_v28 = vmul.f32 1.442695, %v1125_v31  ;;  %v1152_v63 = vmul.f32 1.442695, %v1126_v2  ;;  %v1154_v58 = vmul.f32 1.442695, %v1127_v54 }
 0x1aa   : > { %849 = vmax.xlane.f32.xlu0 %v4069_v17  ;;  %3198 = vpow2.f32 %v1136_v3  ;;  %v1156_v53 = vmul.f32 1.442695, %v1128_v41  ;;  %v1158_v21 = vmul.f32 1.442695, %v1129_v33  ;;  %v1160_v2 = vmul.f32 1.442695, %v1130_v13 }
 0x1ab   : > { %3200 = vpow2.f32 %v1138_v62  ;;  %v1162_v3 = vmul.f32 1.442695, %v1131_v48 }
 0x1ac   : > { %3202 = vpow2.f32 %v1140_v12 }
 0x1ad   : > { %3204 = vpow2.f32 %v1142_v5 }
 0x1ae   : > { %851 = vmax.xlane.f32.xlu0 %v4090_v0  ;;  %3206 = vpow2.f32 %v1144_v6 }
 0x1af   : > { %3208 = vpow2.f32 %v1146_v22 }
 0x1b0   : > { %3210 = vpow2.f32 %v1148_v47 }
 0x1b1   : > { %3212 = vpow2.f32 %v1150_v28 }
 0x1b2   : > { %v4136_v49 = vpop.eup %3194  ;;  %853 = vmax.xlane.f32.xlu0 %v4084_v11  ;;  %3214 = vpow2.f32 %v1152_v63  ;;  %v2983_v63 = vpack.c.bf16 %v3738_v27, %v3706_v15  ;;  %v2999_v27 = vpack.c.bf16 %v3743_v29, %v3782_v43 }
 0x1b3   : > { %v4139_v60 = vpop.eup %3196  ;;  %3216 = vpow2.f32 %v1154_v58 }
 0x1b4   : > { %v1164_v18 = vadd.f32 %v4139_v60, %v4136_v49  ;;  %v4143_v30 = vpop.eup %3198  ;;  %3218 = vpow2.f32 %v1156_v53  ;;  %2984 = vmatprep.subr.bf16.mxu1 %v2983_v63 }
 0x1b5   : > { %v4146_v42 = vpop.eup %3200  ;;  %3220 = vpow2.f32 %v1158_v21  ;;  %2986 = vmatpush3.bf16.msra.mxu1 %v2983_v63  ;;  %v2991_v21 = vpack.c.bf16 %v3720_v20, %v3754_v32 }
 0x1b6   : > { %v1165_v45 = vadd.f32 %v4143_v30, %v1164_v18  ;;  %v4149_v26 = vpop.eup %3202  ;;  %3222 = vpow2.f32 %v1160_v2 }
 0x1b7   : > { %v4152_v34 = vpop.eup %3204  ;;  %3224 = vpow2.f32 %v1162_v3 }
 0x1b8   : > { %v1166_v37 = vadd.f32 %v4146_v42, %v1165_v45  ;;  %v3207_v51 = vpop.eup %3206 }
 0x1b9   : > { %v3209_v31 = vpop.eup %3208 }
 0x1ba   : > { %v1167_v59 = vadd.f32 %v4149_v26, %v1166_v37  ;;  %v3211_v16 = vpop.eup %3210 }
 0x1bb   : > { %v3213_v62 = vpop.eup %3212 }
 0x1bc   : > { %v1168_v7 = vadd.f32 %v4152_v34, %v1167_v59  ;;  %v3215_v5 = vpop.eup %3214  ;;  %v2987_v59 = vpack.c.bf16 %v3703_v14, %v3690_v9  ;;  %v3003_v9 = vpack.c.bf16 %v3759_v35, %v3796_v50  ;;  %v3007_v14 = vpack.c.bf16 %v3771_v40, %v3805_v52 }
 0x1bd   : > { %v3217_v6 = vpop.eup %3216 }
 0x1be   : > { %v1169_v36 = vadd.f32 %v3207_v51, %v1168_v7  ;;  %v3219_v47 = vpop.eup %3218  ;;  %2988 = vmatprep.subr.bf16.mxu1 %v2987_v59 }
 0x1bf   : > { %v3221_v33 = vpop.eup %3220  ;;  %2990 = vmatpush3.bf16.msra.mxu1 %v2987_v59 }
 0x1c0   : > { %v1170_v4 = vadd.f32 %v3209_v31, %v1169_v36  ;;  %v3223_v45 = vpop.eup %3222  ;;  %v2995_v36 = vpack.c.bf16 %v3731_v24, %v3768_v39  ;;  %2992 = vmatprep.subr.bf16.mxu1 %v2991_v21 }
 0x1c1   : > { %v3225_v37 = vpop.eup %3224 }
 0x1c2   : > { %v1171_v54 = vadd.f32 %v3211_v16, %v1170_v4 }
 0x1c3   : > { %2994 = vmatpush3.bf16.msra.mxu1 %v2991_v21 }
 0x1c4   : > { %v1172_v12 = vadd.f32 %v3213_v62, %v1171_v54  ;;  %2996 = vmatprep.subr.bf16.mxu1 %v2995_v36 }
 0x1c6   : > { %v1173_v41 = vadd.f32 %v3215_v5, %v1172_v12 }
 0x1c7   : > { %2998 = vmatpush3.bf16.msra.mxu1 %v2995_v36 }
 0x1c8   : > { %v1174_v22 = vadd.f32 %v3217_v6, %v1173_v41  ;;  %3000 = vmatprep.subr.bf16.mxu1 %v2999_v27 }
 0x1ca   : > { %v1175_v18 = vadd.f32 %v3219_v47, %v1174_v22 }
 0x1cb   : > { %3002 = vmatpush3.bf16.msra.mxu1 %v2999_v27 }
 0x1cc   : > { %v1176_v28 = vadd.f32 %v3221_v33, %v1175_v18  ;;  %3004 = vmatprep.subr.bf16.mxu1 %v3003_v9 }
 0x1ce   : > { %v1177_v13 = vadd.f32 %v3223_v45, %v1176_v28  ;;  %v4706_v28 = vld [vmem:[#allocation26_spill] sm:$0xff] }
 0x1cf   : > { %3006 = vmatpush3.bf16.msra.mxu1 %v3003_v9 }
 0x1d0   : > { %v1178_v48 = vadd.f32 %v3225_v37, %v1177_v13  ;;  %3008 = vmatprep.subr.bf16.mxu1 %v3007_v14 }
 0x1d2   : > { %v1179_v58 = vrot.slane %v1178_v48, 4 }
 0x1d3   : > { %3010 = vmatpush3.bf16.msra.mxu1 %v3007_v14 }
 0x1d4   : > { %v1180_v53 = vadd.f32 %v1179_v58, %v1178_v48 }
 0x1d6   : > { %v1181_v7 = vrot.slane %v1180_v53, 2 }
 0x1d8   : > { %v1182_v2 = vadd.f32 %v1181_v7, %v1180_v53 }
 0x1da   : > { %v1183_v15 = vrot.slane %v1182_v2, 1 }
 0x1dc   : > { %v1184_v4 = vadd.f32 %v1183_v15, %v1182_v2 }
 0x1de   : > { %3226 = vrcp.f32 %v1184_v4 }
 0x1e8   : > { %v3227_v20 = vpop.eup %3226 }
 0x1e9   : > { %v1186_v24 = vmul.f32 %v3227_v20, %v4136_v49  ;;  %v1187_v32 = vmul.f32 %v3227_v20, %v4139_v60  ;;  %v1188_v29 = vmul.f32 %v3227_v20, %v4143_v30  ;;  %v1189_v39 = vmul.f32 %v3227_v20, %v4146_v42 }
 0x1ea   : > { %v1190_v43 = vmul.f32 %v3227_v20, %v4149_v26  ;;  %v1191_v35 = vmul.f32 %v3227_v20, %v4152_v34  ;;  %v1192_v50 = vmul.f32 %v3227_v20, %v3207_v51  ;;  %v1193_v3 = vmul.f32 %v3227_v20, %v3209_v31 }
 0x1eb   : > { %1347 = vxpose.xlu1.b32.start [1/16] %v1186_v24, 128  ;;  %v1194_v54 = vmul.f32 %v3227_v20, %v3211_v16  ;;  %v1195_v40 = vmul.f32 %v3227_v20, %v3213_v62  ;;  %v1196_v52 = vmul.f32 %v3227_v20, %v3215_v5  ;;  %v1197_v12 = vmul.f32 %v3227_v20, %v3217_v6 }
 0x1ec   : > { %v1198_v49 = vmul.f32 %v3227_v20, %v3219_v47  ;;  %v1199_v41 = vmul.f32 %v3227_v20, %v3221_v33  ;;  %v1200_v60 = vmul.f32 %v3227_v20, %v3223_v45  ;;  %v1201_v22 = vmul.f32 %v3227_v20, %v3225_v37 }
 0x1ed   : > { %v3011_v30 = vpack.c.bf16 %v3787_v46, %v3821_v57 }
 0x1ef   : > { %1348 = vxpose.xlu1.b32.cont [2/16] %v1187_v32, 128  ;;  %3012 = vmatprep.subr.bf16.mxu1 %v3011_v30 }
 0x1f0   : > { %3014 = vmatpush3.bf16.msra.mxu1 %v3011_v30 }
 0x1f3   : > { %1349 = vxpose.xlu1.b32.cont [3/16] %v1188_v29, 128 }
 0x1f7   : > { %1350 = vxpose.xlu1.b32.cont [4/16] %v1189_v39, 128 }
 0x1fb   : > { %1351 = vxpose.xlu1.b32.cont [5/16] %v1190_v43, 128 }
 0x1ff   : > { %1352 = vxpose.xlu1.b32.cont [6/16] %v1191_v35, 128 }
 0x203   : > { %1353 = vxpose.xlu1.b32.cont [7/16] %v1192_v50, 128  ;;  %v824_v42 = vpop.xlane.xlu0 %823 }
 0x204   : > { %v855_v26 = vsub.f32 %v3971_v25, %v824_v42 }
 0x206   : > { %v871_v34 = vmul.f32 1.442695, %v855_v26 }
 0x207   : > { %1354 = vxpose.xlu1.b32.cont [8/16] %v1193_v3, 128  ;;  %v826_v51 = vpop.xlane.xlu0 %825 }
 0x208   : > { %3228 = vpow2.f32 %v871_v34  ;;  %v856_v31 = vsub.f32 %v3975_v56, %v826_v51  ;;  %v4708_v34 = vld [vmem:[#allocation13_spill] sm:$0xff]  ;;  %v3292_v51 = vld [vmem:[%s3816_s25 + $0x18] sm:$0xff] }
 0x20a   : > { %v873_v16 = vmul.f32 1.442695, %v856_v31  ;;  %v3293_v31 = vld [vmem:[%s3816_s25 + $0x8] sm:$0xff] }
 0x20b   : > { %1355 = vxpose.xlu1.b32.cont [9/16] %v1194_v54, 128  ;;  %v4179_v46 = vpop.xlane.xlu0 %827 }
 0x20c   : > { %3230 = vpow2.f32 %v873_v16  ;;  %v4709_v16 = vld [vmem:[#allocation14_spill] sm:$0xff] }
 0x20f   : > { %1356 = vxpose.xlu1.b32.cont [10/16] %v1195_v40, 128  ;;  %v830_v57 = vpop.xlane.xlu0 %829 }
 0x210   : > { %v858_v62 = vsub.f32 %v3978_v38, %v830_v57  ;;  %v3294_v57 = vld [vmem:[%s3816_s25 + $0x10] sm:$0xff] }
 0x212   : > { %v4182_v5 = vpop.eup %3228  ;;  %v877_v6 = vmul.f32 1.442695, %v858_v62  ;;  %v4710_v62 = vld [vmem:[#allocation18_spill] sm:$0xff] }
 0x213   : > { %1357 = vxpose.xlu1.b32.cont [11/16] %v1196_v52, 128  ;;  %903 = vadd.xlane.f32.xlu0 %v4182_v5  ;;  %v832_v25 = vpop.xlane.xlu0 %831 }
 0x214   : > { %3232 = vpow2.f32 %v877_v6  ;;  %v859_v47 = vsub.f32 %v4000_v55, %v832_v25  ;;  %v3295_v25 = vld [vmem:[%s3816_s25 + $0x20] sm:$0xff]  ;;  %s4599_s25 = scalar_lea.hbm %s4656_s9, %s2330_s19 }
 0x216   : > { %v4186_v56 = vpop.eup %3230  ;;  %v879_v18 = vmul.f32 1.442695, %v859_v47  ;;  %v4711_v47 = vld [vmem:[#allocation15_spill] sm:$0xff] }
 0x217   : > { %1358 = vxpose.xlu1.b32.cont [12/16] %v1197_v12, 128  ;;  %905 = vadd.xlane.f32.xlu0 %v4186_v56  ;;  %v834_v33 = vpop.xlane.xlu0 %833 }
 0x218   : > { %3234 = vpow2.f32 %v879_v18  ;;  %v860_v38 = vsub.f32 %v4706_v28, %v834_v33  ;;  %v4712_v33 = vld [vmem:[#allocation16_spill] sm:$0xff]  ;;  %v4713_v28 = vld [vmem:[#allocation17_spill] sm:$0xff] }
 0x21a   : > { %v881_v45 = vmul.f32 1.442695, %v860_v38 }
 0x21b   : > { %1359 = vxpose.xlu1.b32.cont [13/16] %v1198_v49, 128  ;;  %v836_v13 = vpop.xlane.xlu0 %835 }
 0x21c   : > { %3236 = vpow2.f32 %v881_v45  ;;  %v861_v63 = vsub.f32 %v4024_v61, %v836_v13  ;;  %v4714_v45 = vld [vmem:[#allocation20_spill] sm:$0xff]  ;;  %v4715_v13 = vld [vmem:[#allocation19_spill] sm:$0xff] }
 0x21e   : > { %v4191_v37 = vpop.eup %3232  ;;  %v883_v48 = vmul.f32 1.442695, %v861_v63 }
 0x21f   : > { %1360 = vxpose.xlu1.b32.cont [14/16] %v1199_v41, 128  ;;  %909 = vadd.xlane.f32.xlu0 %v4191_v37  ;;  %v838_v55 = vpop.xlane.xlu0 %837 }
 0x220   : > { %3238 = vpow2.f32 %v883_v48  ;;  %v862_v58 = vsub.f32 %v4013_v23, %v838_v55  ;;  %v4716_v48 = vld [vmem:[#allocation22_spill] sm:$0xff]  ;;  %v4717_v55 = vld [vmem:[#allocation21_spill] sm:$0xff] }
 0x222   : > { %v4195_v59 = vpop.eup %3234  ;;  %v885_v53 = vmul.f32 1.442695, %v862_v58 }
 0x223   : > { %1361 = vxpose.xlu1.b32.cont [15/16] %v1200_v60, 128  ;;  %911 = vadd.xlane.f32.xlu0 %v4195_v59  ;;  %v840_v7 = vpop.xlane.xlu0 %839 }
 0x224   : > { %3240 = vpow2.f32 %v885_v53  ;;  %v863_v61 = vsub.f32 %v4043_v8, %v840_v7  ;;  %v4718_v53 = vld [vmem:[#allocation23_spill] sm:$0xff] }
 0x226   : > { %v4199_v21 = vpop.eup %3236  ;;  %v887_v36 = vmul.f32 1.442695, %v863_v61  ;;  %v4719_v61 = vld [vmem:[#allocation24_spill] sm:$0xff] }
 0x227   : > { %1362 = vxpose.xlu1.b32.end [16/16] %v1201_v22, 128  ;;  %913 = vadd.xlane.f32.xlu0 %v4199_v21  ;;  %v842_v2 = vpop.xlane.xlu0 %841 }
 0x228   : > { %3242 = vpow2.f32 %v887_v36  ;;  %v864_v23 = vsub.f32 %v4035_v1, %v842_v2 }
 0x22a   : > { %v4203_v15 = vpop.eup %3238  ;;  %v889_v27 = vmul.f32 1.442695, %v864_v23 }
 0x22b   : > { %915 = vadd.xlane.f32.xlu0 %v4203_v15  ;;  %v844_v4 = vpop.xlane.xlu0 %843 }
 0x22c   : > { %3244 = vpow2.f32 %v889_v27  ;;  %v865_v14 = vsub.f32 %v4060_v44, %v844_v4  ;;  %v4707_v44 = vld [vmem:[#allocation25_spill] sm:$0xff] }
 0x22e   : > { %v4206_v9 = vpop.eup %3240  ;;  %v891_v29 = vmul.f32 1.442695, %v865_v14 }
 0x22f   : > { %917 = vadd.xlane.f32.xlu0 %v4206_v9  ;;  %v846_v8 = vpop.xlane.xlu0 %845 }
 0x230   : > { %v866_v20 = vsub.f32 %v4052_v19, %v846_v8  ;;  %v857_v19 = vsub.f32 %v4707_v44, %v4179_v46 }
 0x232   : > { %v4211_v24 = vpop.eup %3242  ;;  %v893_v32 = vmul.f32 1.442695, %v866_v20  ;;  %v875_v12 = vmul.f32 1.442695, %v857_v19 }
 0x233   : > { %919 = vadd.xlane.f32.xlu0 %v4211_v24  ;;  %v848_v1 = vpop.xlane.xlu0 %847 }
 0x234   : > { %3246 = vpow2.f32 %v893_v32  ;;  %v867_v39 = vsub.f32 %v4077_v10, %v848_v1 }
 0x235   : > { %3248 = vpow2.f32 %v891_v29 }
 0x236   : > { %v4215_v43 = vpop.eup %3244  ;;  %v895_v50 = vmul.f32 1.442695, %v867_v39 }
 0x237   : > { %921 = vadd.xlane.f32.xlu0 %v4215_v43  ;;  %v850_v35 = vpop.xlane.xlu0 %849 }
 0x238   : > { %3250 = vpow2.f32 %v895_v50  ;;  %v868_v10 = vsub.f32 %v4069_v17, %v850_v35 }
 0x23a   : > { %v897_v60 = vmul.f32 1.442695, %v868_v10 }
 0x23b   : > { %v852_v3 = vpop.xlane.xlu0 %851 }
 0x23c   : > { %v869_v54 = vsub.f32 %v4090_v0, %v852_v3 }
 0x23e   : > { %v4221_v40 = vpop.eup %3246  ;;  %v899_v52 = vmul.f32 1.442695, %v869_v54 }
 0x23f   : > { %925 = vadd.xlane.f32.xlu0 %v4221_v40  ;;  %v854_v49 = vpop.xlane.xlu0 %853  ;;  %v4225_v41 = vpop.eup %3248 }
 0x240   : > { %3252 = vpow2.f32 %v899_v52  ;;  %v870_v22 = vsub.f32 %v4084_v11, %v854_v49 }
 0x241   : > { %3254 = vpow2.f32 %v875_v12 }
 0x242   : > { %v4229_v0 = vpop.eup %3250  ;;  %3256 = vpow2.f32 %v897_v60  ;;  %v901_v30 = vmul.f32 1.442695, %v870_v22 }
 0x243   : > { %923 = vadd.xlane.f32.xlu0 %v4225_v41 }
 0x244   : > { %3258 = vpow2.f32 %v901_v30 }
 0x247   : > { %927 = vadd.xlane.f32.xlu0 %v4229_v0 }
 0x24a   : > { %v4232_v17 = vpop.eup %3252 }
 0x24b   : > { %931 = vadd.xlane.f32.xlu0 %v4232_v17  ;;  %v4235_v42 = vpop.eup %3254 }
 0x24c   : > { %v4238_v11 = vpop.eup %3256 }
 0x24e   : > { %907 = vadd.xlane.f32.xlu1 %v4235_v42  ;;  %v4241_v26 = vpop.eup %3258 }
 0x252   : > { %929 = vadd.xlane.f32.xlu1 %v4238_v11 }
 0x256   : > { %933 = vadd.xlane.f32.xlu1 %v4241_v26 }
 0x261   : > { %2064 = vperm.xlu0 %3192, %v4708_v34  }
 0x265   : > { %2079 = vperm.xlu0 %3192, %v3292_v51  }
 0x267   : > { %2069 = vperm.xlu1 %3193, %v3293_v31  }
 0x269   : > { %2089 = vperm.xlu0 %3192, %v4709_v16  }
 0x26b   : > { %v1363_v46 = vpop.trf.xlu1  ;;  %2074 = vperm.xlu1 %3193, %v3294_v57  }
 0x26c   : > { %2815 = vmatprep.mubr.f32.mxu1 %v1363_v46 }
 0x26d   : > { %2099 = vperm.xlu0 %3192, %v4710_v62  }
 0x26f   : > { %v1364_v6 = vpop.trf.xlu1  ;;  %2084 = vperm.xlu1 %3193, %v3295_v25   ;;  %v1717_v25 = vld [vmem:[#allocation5 + $0x80] sm:$0xff] }
 0x270   : > { %2816 = vmatmul.mubr.f32.vlgmr.msra.gmra.mrb[16].mxu1 %v1364_v6 }
 0x271   : > { %2109 = vperm.xlu0 %3192, %v4711_v47  }
 0x273   : > { %v1365_v18 = vpop.trf.xlu1  ;;  %2094 = vperm.xlu1 %3193, %v4712_v33  }
 0x274   : > { %2818 = vmatprep.mubr.f32.mxu1 %v1365_v18 }
 0x275   : > { %2119 = vperm.xlu0 %3192, %v4713_v28  }
 0x277   : > { %v1366_v38 = vpop.trf.xlu1  ;;  %2104 = vperm.xlu1 %3193, %v4714_v45  }
 0x278   : > { %2819 = vmatmul.mubr.f32.gmra.mrb[18].mxu1 %v1366_v38  ;;  %v1702_v38 = vld [vmem:[#allocation5 + $0x8] sm:$0xff] }
 0x279   : > { %2129 = vperm.xlu0 %3192, %v4715_v13  }
 0x27b   : > { %v1367_v63 = vpop.trf.xlu1  ;;  %2114 = vperm.xlu1 %3193, %v4716_v48   ;;  %v1720_v48 = vld [vmem:[#allocation5 + $0x98] sm:$0xff] }
 0x27c   : > { %2821 = vmatprep.mubr.f32.mxu1 %v1367_v63  ;;  %v1719_v63 = vld [vmem:[#allocation5 + $0x90] sm:$0xff] }
 0x27d   : > { %2139 = vperm.xlu0 %3192, %v4717_v55  }
 0x27f   : > { %v1368_v58 = vpop.trf.xlu1  ;;  %2124 = vperm.xlu1 %3193, %v4718_v53   ;;  %v1704_v53 = vld [vmem:[#allocation5 + $0x18] sm:$0xff] }
 0x280   : > { %2822 = vmatmul.mubr.f32.gmra.mrb[20].mxu1 %v1368_v58  ;;  %v1703_v58 = vld [vmem:[#allocation5 + $0x10] sm:$0xff] }
 0x283   : > { %v1369_v7 = vpop.trf.xlu1  ;;  %2134 = vperm.xlu1 %3193, %v4719_v61  }
 0x284   : > { %2824 = vmatprep.mubr.f32.mxu1 %v1369_v7 }
 0x287   : > { %v1370_v36 = vpop.trf.xlu1 }
 0x288   : > { %2825 = vmatmul.mubr.f32.gmra.mrb[22].mxu1 %v1370_v36  ;;  %v3053_v36 = vpack.c.bf16 %v1704_v53, %v1703_v58 }
 0x28b   : > { %v1371_v2 = vpop.trf.xlu1 }
 0x28c   : > { %2827 = vmatprep.mubr.f32.mxu1 %v1371_v2 }
 0x28f   : > { %v1372_v23 = vpop.trf.xlu1 }
 0x290   : > { %2828 = vmatmul.mubr.f32.gmra.mrb[24].mxu1 %v1372_v23  ;;  %v1721_v23 = vld [vmem:[#allocation5 + $0xa0] sm:$0xff] }
 0x293   : > { %v1373_v27 = vpop.trf.xlu1 }
 0x294   : > { %2830 = vmatprep.mubr.f32.mxu1 %v1373_v27  ;;  %v1722_v27 = vld [vmem:[#allocation5 + $0xa8] sm:$0xff] }
 0x297   : > { %v1374_v4 = vpop.trf.xlu1 }
 0x298   : > { %2831 = vmatmul.mubr.f32.gmra.mrb[26].mxu1 %v1374_v4  ;;  %v3055_v4 = vpack.c.bf16 %v1722_v27, %v1721_v23 }
 0x29b   : > { %v1375_v8 = vpop.trf.xlu1 }
 0x29c   : > { %2833 = vmatprep.mubr.f32.mxu1 %v1375_v8 }
 0x29f   : > { %v1376_v14 = vpop.trf.xlu1 }
 0x2a0   : > { %2834 = vmatmul.mubr.f32.gmra.mrb[28].mxu1 %v1376_v14  ;;  %v904_v20 = vpop.xlane.xlu0 %903 }
 0x2a1   : > { %3260 = vrcp.f32 %v904_v20  ;;  %v1706_v20 = vld [vmem:[#allocation5 + $0x28] sm:$0xff] }
 0x2a3   : > { %v1377_v32 = vpop.trf.xlu1 }
 0x2a4   : > { %2836 = vmatprep.mubr.f32.mxu1 %v1377_v32  ;;  %v906_v1 = vpop.xlane.xlu0 %905 }
 0x2a5   : > { %3262 = vrcp.f32 %v906_v1 }
 0x2a7   : > { %v1378_v29 = vpop.trf.xlu1 }
 0x2a8   : > { %2837 = vmatmul.mubr.f32.gmra.mrb[30].mxu1 %v1378_v29  ;;  %v1723_v29 = vld [vmem:[#allocation5 + $0xb0] sm:$0xff] }
 0x2ab   : > { %v3261_v39 = vpop.eup %3260 }
 0x2ac   : > { %v4261_v35 = vmul.f32 %v3261_v39, %v4182_v5  ;;  %v910_v19 = vpop.xlane.xlu0 %909  ;;  %v1724_v39 = vld [vmem:[#allocation5 + $0xb8] sm:$0xff] }
 0x2ad   : > { %3264 = vrcp.f32 %v910_v19  ;;  %v1707_v19 = vld [vmem:[#allocation5 + $0x30] sm:$0xff] }
 0x2ae   : > { %2759 = vmatprep.mubr.f32.mxu0 %v4261_v35 }
 0x2af   : > { %v3263_v50 = vpop.eup %3262 }
 0x2b0   : > { %v4265_v44 = vmul.f32 %v3263_v50, %v4186_v56  ;;  %v912_v3 = vpop.xlane.xlu0 %911  ;;  %v3059_v50 = vpack.c.bf16 %v1724_v39, %v1723_v29 }
 0x2b1   : > { %3266 = vrcp.f32 %v912_v3  ;;  %v1708_v3 = vld [vmem:[#allocation5 + $0x38] sm:$0xff] }
 0x2b2   : > { %2760 = vmatmul.mubr.f32.vlgmr.msra.gmra.mrb[2].mxu0 %v4265_v44 }
 0x2b4   : > { %v914_v54 = vpop.xlane.xlu0 %913 }
 0x2b7   : > { %v3265_v56 = vpop.eup %3264 }
 0x2b8   : > { %v916_v52 = vpop.xlane.xlu0 %915  ;;  %v4272_v16 = vmul.f32 %v3265_v56, %v4191_v37  ;;  %v1710_v56 = vld [vmem:[#allocation5 + $0x48] sm:$0xff] }
 0x2bb   : > { %v3267_v30 = vpop.eup %3266 }
 0x2bc   : > { %v918_v12 = vpop.xlane.xlu0 %917  ;;  %v4276_v57 = vmul.f32 %v3267_v30, %v4195_v59  ;;  %v1701_v59 = vld [vmem:[#allocation5] sm:$0xff] }
 0x2bd   : > { %v3049_v13 = vpack.c.bf16 %v1702_v38, %v1701_v59  ;;  %v1732_v38 = vld [vmem:[#allocation5 + $0xf8] sm:$0xff] }
 0x2c0   : > { %v920_v10 = vpop.xlane.xlu0 %919 }
 0x2c4   : > { %v922_v49 = vpop.xlane.xlu0 %921 }
 0x2cc   : > { %v926_v60 = vpop.xlane.xlu0 %925 }
 0x2d0   : > { %v924_v22 = vpop.xlane.xlu0 %923 }
 0x2d4   : > { %v928_v51 = vpop.xlane.xlu0 %927 }
 0x2d8   : > { %v932_v33 = vpop.xlane.xlu0 %931 }
 0x2db   : > { %v908_v5 = vpop.xlane.xlu1 %907 }
 0x2dc   : > { %3268 = vrcp.f32 %v908_v5 }
 0x2dd   : > { %3270 = vrcp.f32 %v914_v54 }
 0x2de   : > { %3272 = vrcp.f32 %v916_v52  ;;  %v3061_v52 = vpack.c.bf16 %v1708_v3, %v1707_v19  ;;  %v1750_v19 = vld [vmem:[#allocation5 + $0x188] sm:$0xff] }
 0x2df   : > { %3274 = vrcp.f32 %v918_v12  ;;  %v930_v6 = vpop.xlane.xlu1 %929 }
 0x2e0   : > { %3276 = vrcp.f32 %v920_v10  ;;  %v1725_v10 = vld [vmem:[#allocation5 + $0xc0] sm:$0xff] }
 0x2e1   : > { %3278 = vrcp.f32 %v922_v49  ;;  %v1726_v49 = vld [vmem:[#allocation5 + $0xc8] sm:$0xff] }
 0x2e2   : > { %3280 = vrcp.f32 %v924_v22 }
 0x2e3   : > { %3282 = vrcp.f32 %v926_v60  ;;  %v3063_v60 = vpack.c.bf16 %v1726_v49, %v1725_v10 }
 0x2e4   : > { %3284 = vrcp.f32 %v928_v51  ;;  %v1728_v51 = vld [vmem:[#allocation5 + $0xd8] sm:$0xff] }
 0x2e5   : > { %3286 = vrcp.f32 %v930_v6  ;;  %v1712_v6 = vld [vmem:[#allocation5 + $0x58] sm:$0xff] }
 0x2e6   : > { %v3269_v34 = vpop.eup %3268  ;;  %3288 = vrcp.f32 %v932_v33  ;;  %v1714_v33 = vld [vmem:[#allocation5 + $0x68] sm:$0xff] }
 0x2e7   : > { %v4269_v31 = vmul.f32 %v3269_v34, %v4235_v42  ;;  %v3271_v46 = vpop.eup %3270  ;;  %v1718_v42 = vld [vmem:[#allocation5 + $0x88] sm:$0xff]  ;;  %v1727_v34 = vld [vmem:[#allocation5 + $0xd0] sm:$0xff] }
 0x2e8   : > { %v3273_v62 = vpop.eup %3272  ;;  %v4281_v47 = vmul.f32 %v3271_v46, %v4199_v21  ;;  %v3047_v37 = vpack.c.bf16 %v1718_v42, %v1717_v25  ;;  %v934_v21 = vpop.xlane.xlu1 %933  ;;  %v1730_v42 = vld [vmem:[#allocation5 + $0xe8] sm:$0xff] }
 0x2e9   : > { %2762 = vmatprep.mubr.f32.mxu0 %v4269_v31  ;;  %v3275_v18 = vpop.eup %3274  ;;  %v4284_v28 = vmul.f32 %v3273_v62, %v4203_v15  ;;  %v3051_v15 = vpack.c.bf16 %v1720_v48, %v1719_v63  ;;  %3290 = vrcp.f32 %v934_v21  ;;  %v1711_v62 = vld [vmem:[#allocation5 + $0x50] sm:$0xff]  ;;  %v1716_v63 = vld [vmem:[#allocation5 + $0x78] sm:$0xff] }
 0x2ea   : > { %2763 = vmatmul.mubr.f32.gmra.mrb[4].mxu0 %v4272_v16  ;;  %v3277_v45 = vpop.eup %3276  ;;  %3048 = vmatprep.subr.bf16.mxu1 %v3047_v37  ;;  %v4289_v55 = vmul.f32 %v3275_v18, %v4206_v9  ;;  %v3069_v25 = vpack.c.bf16 %v1712_v6, %v1711_v62  ;;  %v1713_v18 = vld [vmem:[#allocation5 + $0x60] sm:$0xff]  ;;  %v1736_v62 = vld [vmem:[#allocation5 + $0x118] sm:$0xff] }
 0x2eb   : > { %2765 = vmatprep.mubr.f32.mxu0 %v4276_v57  ;;  %3050 = vmatpush3.bf16.msra.mxu1 %v3049_v13  ;;  %v3279_v7 = vpop.eup %3278  ;;  %v4292_v61 = vmul.f32 %v3277_v45, %v4211_v24  ;;  %v1705_v24 = vld [vmem:[#allocation5 + $0x20] sm:$0xff]  ;;  %v3073_v59 = vpack.c.bf16 %v1714_v33, %v1713_v18  ;;  %v1715_v13 = vld [vmem:[#allocation5 + $0x70] sm:$0xff]  ;;  %v1738_v33 = vld [vmem:[#allocation5 + $0x128] sm:$0xff] }
 0x2ec   : > { %v3281_v2 = vpop.eup %3280  ;;  %3052 = vmatprep.subr.bf16.mxu1 %v3051_v15  ;;  %v4297_v9 = vmul.f32 %v3279_v7, %v4215_v43  ;;  %v3057_v1 = vpack.c.bf16 %v1706_v20, %v1705_v24  ;;  %v3077_v48 = vpack.c.bf16 %v1716_v63, %v1715_v13  ;;  %v1753_v6 = vld [vmem:[#allocation5 + $0x1a0] sm:$0xff]  ;;  %v1740_v13 = vld [vmem:[#allocation5 + $0x138] sm:$0xff] }
 0x2ed   : > { %v3283_v8 = vpop.eup %3282  ;;  %v4300_v14 = vmul.f32 %v3281_v2, %v4225_v41  ;;  %v1757_v63 = vld [vmem:[#allocation5 + $0x1c0] sm:$0xff] }
 0x2ee   : > { %2766 = vmatmul.mubr.f32.gmra.mrb[6].mxu0 %v4281_v47  ;;  %v3285_v32 = vpop.eup %3284  ;;  %v4305_v43 = vmul.f32 %v3283_v8, %v4221_v40 }
 0x2ef   : > { %2768 = vmatprep.mubr.f32.mxu0 %v4284_v28  ;;  %3054 = vmatpush3.bf16.msra.mxu1 %v3053_v36  ;;  %v3287_v41 = vpop.eup %3286  ;;  %v4308_v54 = vmul.f32 %v3285_v32, %v4229_v0  ;;  %v1709_v0 = vld [vmem:[#allocation5 + $0x40] sm:$0xff] }
 0x2f0   : > { %3056 = vmatprep.subr.bf16.mxu1 %v3055_v4  ;;  %v3289_v12 = vpop.eup %3288  ;;  %v4313_v40 = vmul.f32 %v3287_v41, %v4238_v11  ;;  %v3065_v30 = vpack.c.bf16 %v1710_v56, %v1709_v0  ;;  %v3067_v11 = vpack.c.bf16 %v1728_v51, %v1727_v34  ;;  %v1734_v0 = vld [vmem:[#allocation5 + $0x108] sm:$0xff]  ;;  %v1751_v56 = vld [vmem:[#allocation5 + $0x190] sm:$0xff] }
 0x2f1   : > { %v4316_v22 = vmul.f32 %v3289_v12, %v4232_v17  ;;  %v1729_v17 = vld [vmem:[#allocation5 + $0xe0] sm:$0xff] }
 0x2f2   : > { %2769 = vmatmul.mubr.f32.gmra.mrb[8].mxu0 %v4289_v55  ;;  %v3071_v37 = vpack.c.bf16 %v1730_v42, %v1729_v17 }
 0x2f3   : > { %2771 = vmatprep.mubr.f32.mxu0 %v4292_v61  ;;  %3058 = vmatpush3.bf16.msra.mxu1 %v3057_v1  ;;  %v3291_v5 = vpop.eup %3290 }
 0x2f4   : > { %3060 = vmatprep.subr.bf16.mxu1 %v3059_v50  ;;  %v4321_v46 = vmul.f32 %v3291_v5, %v4241_v26  ;;  %v1731_v26 = vld [vmem:[#allocation5 + $0xf0] sm:$0xff]  ;;  %v1749_v50 = vld [vmem:[#allocation5 + $0x180] sm:$0xff] }
 0x2f5   : > { %v3075_v45 = vpack.c.bf16 %v1732_v38, %v1731_v26  ;;  %v3079_v3 = vpack.c.bf16 %v1750_v19, %v1749_v50  ;;  %v1733_v5 = vld [vmem:[#allocation5 + $0x100] sm:$0xff]  ;;  %v1756_v26 = vld [vmem:[#allocation5 + $0x1b8] sm:$0xff] }
 0x2f6   : > { %2772 = vmatmul.mubr.f32.gmra.mrb[10].mxu0 %v4297_v9  ;;  %v3081_v34 = vpack.c.bf16 %v1734_v0, %v1733_v5  ;;  %v1763_v5 = vld [vmem:[#allocation5 + $0x1f0] sm:$0xff]  ;;  %v1764_v0 = vld [vmem:[#allocation5 + $0x1f8] sm:$0xff] }
 0x2f7   : > { %2774 = vmatprep.mubr.f32.mxu0 %v4300_v14  ;;  %3062 = vmatpush3.bf16.msra.mxu1 %v3061_v52 }
 0x2f8   : > { %3064 = vmatprep.subr.bf16.mxu1 %v3063_v60 }
 0x2fa   : > { %2775 = vmatmul.mubr.f32.gmra.mrb[12].mxu0 %v4305_v43 }
 0x2fb   : > { %2777 = vmatprep.mubr.f32.mxu0 %v4308_v54  ;;  %3066 = vmatpush3.bf16.msra.mxu1 %v3065_v30  ;;  %v1752_v30 = vld [vmem:[#allocation5 + $0x198] sm:$0xff] }
 0x2fc   : > { %3068 = vmatprep.subr.bf16.mxu1 %v3067_v11  ;;  %v3083_v51 = vpack.c.bf16 %v1752_v30, %v1751_v56  ;;  %v1735_v11 = vld [vmem:[#allocation5 + $0x110] sm:$0xff]  ;;  %v3107_v30 = vpack.c.bf16 %v1764_v0, %v1763_v5 }
 0x2fd   : > { %v1747_v56 = vld [vmem:[#allocation5 + $0x170] sm:$0xff] }
 0x2fe   : > { %2778 = vmatmul.mubr.f32.gmra.mrb[14].mxu0 %v4313_v40 }
 0x2ff   : > { %2780 = vmatprep.mubr.f32.mxu0 %v4316_v22  ;;  %3070 = vmatpush3.bf16.msra.mxu1 %v3069_v25  ;;  %v1754_v25 = vld [vmem:[#allocation5 + $0x1a8] sm:$0xff] }
 0x300   : > { %3072 = vmatprep.subr.bf16.mxu1 %v3071_v37  ;;  %v3085_v37 = vpack.c.bf16 %v1736_v62, %v1735_v11  ;;  %v3087_v18 = vpack.c.bf16 %v1754_v25, %v1753_v6  ;;  %v4419_v11 = vld [vmem:[%s3681_s22 + $0x48] sm:$0xff]  ;;  %v4424_v62 = vld [vmem:[%s3681_s22 + $0x50] sm:$0xff]  ;;  %v4429_v6 = vld [vmem:[%s3681_s22 + $0x58] sm:$0xff] }
 0x301   : > { %v3308_v25 = vld [vmem:[%s3681_s22 + $0x60] sm:$0xff] }
 0x302   : > { %2781 = vmatmul.mubr.f32.gmra.mrb[16].mxu0 %v4321_v46 }
 0x303   : > { %2871 = vmatprep.mubr.f32.mxu0 %v4261_v35  ;;  %3074 = vmatpush3.bf16.msra.mxu1 %v3073_v59  ;;  %v1755_v59 = vld [vmem:[#allocation5 + $0x1b0] sm:$0xff] }
 0x304   : > { %3076 = vmatprep.subr.bf16.mxu1 %v3075_v45  ;;  %v3091_v38 = vpack.c.bf16 %v1756_v26, %v1755_v59  ;;  %v1739_v45 = vld [vmem:[#allocation5 + $0x130] sm:$0xff] }
 0x307   : > { %3078 = vmatpush3.bf16.msra.mxu1 %v3077_v48  ;;  %v1758_v48 = vld [vmem:[#allocation5 + $0x1c8] sm:$0xff] }
 0x308   : > { %3111 = vmatprep.subr.bf16.mxu1 %v3079_v3 }
 0x343   : > { %v2817_v21 = vpop.f32.mrb[16].mxu1 }
 0x344   : > { %v1445_v15 = vpop.f32.mrb[17].mxu1 }
 0x345   : > { %v3015_v35 = vpack.c.bf16 %v2817_v21, %v1445_v15  ;;  %v3093_v21 = vpack.c.bf16 %v1740_v13, %v1739_v45  ;;  %v1741_v15 = vld [vmem:[#allocation5 + $0x140] sm:$0xff] }
 0x347   : > { %3016 = vmatprep.subr.bf16.mxu0 %v3015_v35 }
 0x348   : > { %3018 = vmatpush3.bf16.msra.mxu0 %v3015_v35  ;;  %v1742_v35 = vld [vmem:[#allocation5 + $0x148] sm:$0xff] }
 0x34b   : > { %v2820_v58 = vpop.f32.mrb[18].mxu1 }
 0x34c   : > { %v1455_v53 = vpop.f32.mrb[19].mxu1 }
 0x34d   : > { %v3019_v7 = vpack.c.bf16 %v2820_v58, %v1455_v53  ;;  %v1759_v58 = vld [vmem:[#allocation5 + $0x1d0] sm:$0xff]  ;;  %v3097_v53 = vpack.c.bf16 %v1742_v35, %v1741_v15 }
 0x34f   : > { %3020 = vmatprep.subr.bf16.mxu0 %v3019_v7 }
 0x350   : > { %3022 = vmatpush3.bf16.msra.mxu0 %v3019_v7 }
 0x353   : > { %v2823_v36 = vpop.f32.mrb[20].mxu1 }
 0x354   : > { %v1465_v2 = vpop.f32.mrb[21].mxu1 }
 0x355   : > { %v3023_v23 = vpack.c.bf16 %v2823_v36, %v1465_v2  ;;  %v1743_v36 = vld [vmem:[#allocation5 + $0x150] sm:$0xff]  ;;  %v1744_v2 = vld [vmem:[#allocation5 + $0x158] sm:$0xff] }
 0x357   : > { %3024 = vmatprep.subr.bf16.mxu0 %v3023_v23 }
 0x358   : > { %3026 = vmatpush3.bf16.msra.mxu0 %v3023_v23  ;;  %v1762_v23 = vld [vmem:[#allocation5 + $0x1e8] sm:$0xff] }
 0x35b   : > { %v2826_v27 = vpop.f32.mrb[22].mxu1 }
 0x35c   : > { %v1475_v4 = vpop.f32.mrb[23].mxu1 }
 0x35d   : > { %v3027_v8 = vpack.c.bf16 %v2826_v27, %v1475_v4  ;;  %v3101_v27 = vpack.c.bf16 %v1744_v2, %v1743_v36  ;;  %v1745_v4 = vld [vmem:[#allocation5 + $0x160] sm:$0xff] }
 0x35f   : > { %3028 = vmatprep.subr.bf16.mxu0 %v3027_v8 }
 0x360   : > { %3030 = vmatpush3.bf16.msra.mxu0 %v3027_v8  ;;  %v1746_v8 = vld [vmem:[#allocation5 + $0x168] sm:$0xff] }
 0x363   : > { %v2829_v24 = vpop.f32.mrb[24].mxu1 }
 0x364   : > { %v1485_v20 = vpop.f32.mrb[25].mxu1 }
 0x365   : > { %v3031_v32 = vpack.c.bf16 %v2829_v24, %v1485_v20 }
 0x367   : > { %3032 = vmatprep.subr.bf16.mxu0 %v3031_v32 }
 0x368   : > { %3034 = vmatpush3.bf16.msra.mxu0 %v3031_v32  ;;  %v4378_v32 = vld [vmem:[%s3681_s22 + $0x20] sm:$0xff] }
 0x36b   : > { %v2832_v1 = vpop.f32.mrb[26].mxu1 }
 0x36c   : > { %v1495_v29 = vpop.f32.mrb[27].mxu1 }
 0x36d   : > { %v3035_v39 = vpack.c.bf16 %v2832_v1, %v1495_v29 }
 0x36f   : > { %3036 = vmatprep.subr.bf16.mxu0 %v3035_v39 }
 0x370   : > { %3038 = vmatpush3.bf16.msra.mxu0 %v3035_v39  ;;  %v4387_v39 = vld [vmem:[%s3681_s22 + $0x28] sm:$0xff] }
 0x373   : > { %v2835_v41 = vpop.f32.mrb[28].mxu1 }
 0x374   : > { %v1505_v52 = vpop.f32.mrb[29].mxu1 }
 0x375   : > { %v3039_v12 = vpack.c.bf16 %v2835_v41, %v1505_v52 }
 0x377   : > { %3040 = vmatprep.subr.bf16.mxu0 %v3039_v12 }
 0x378   : > { %3042 = vmatpush3.bf16.msra.mxu0 %v3039_v12  ;;  %v4405_v12 = vld [vmem:[%s3681_s22 + $0x38] sm:$0xff] }
 0x37b   : > { %v2838_v10 = vpop.f32.mrb[30].mxu1 }
 0x37c   : > { %v1515_v49 = vpop.f32.mrb[31].mxu1 }
 0x37d   : > { %v3043_v60 = vpack.c.bf16 %v2838_v10, %v1515_v49 }
 0x37f   : > { %3044 = vmatprep.subr.bf16.mxu0 %v3043_v60 }
 0x380   : > { %3046 = vmatpush3.bf16.msra.mxu0 %v3043_v60  ;;  %v4414_v60 = vld [vmem:[%s3681_s22 + $0x40] sm:$0xff] }
 0x381   : > { %3080 = vmatprep.subr.bf16.mxu0 %v3079_v3  ;;  %v4396_v3 = vld [vmem:[%s3681_s22 + $0x30] sm:$0xff] }
 0x383   : > { %2872 = vmatmul.mubr.f32.vlgmr.msra.gmra.mrb[18].mxu0 %v4265_v44  ;;  %v1737_v44 = vld [vmem:[#allocation5 + $0x120] sm:$0xff] }
 0x384   : > { %2874 = vmatprep.mubr.f32.mxu0 %v4269_v31  ;;  %3082 = vmatpush3.bf16.msra.mxu0 %v3081_v34  ;;  %v4335_v31 = vld [vmem:[%s3681_s22] sm:$0xff] }
 0x385   : > { %v4327_v17 = vpop.f32.mrb[2].mxu0  ;;  %3084 = vmatprep.subr.bf16.mxu0 %v3083_v51 }
 0x386   : > { %v4329_v42 = vpop.f32.mrb[3].mxu0 }
 0x387   : > { %2875 = vmatmul.mubr.f32.gmra.mrb[20].mxu0 %v4272_v16  ;;  %1836 = vmatprep.mubr.f32.mxu1 %v4329_v42  ;;  %v3089_v16 = vpack.c.bf16 %v1738_v33, %v1737_v44  ;;  %v4446_v44 = vld [vmem:[%s3681_s22 + $0x78] sm:$0xff] }
 0x388   : > { %2877 = vmatprep.mubr.f32.mxu0 %v4276_v57  ;;  %1837 = vmatmul.mubr.f32.vlgmr.msra.gmra.mrb[32].mxu1 %v4335_v31  ;;  %v4342_v57 = vld [vmem:[%s3681_s22 + $0x8] sm:$0xff] }
 0x389   : > { %1841 = vmatprep.mubr.f32.mxu1 %v4327_v17  ;;  %3119 = vmatpush3.bf16.msra.mxu1 %v3081_v34  ;;  %v1748_v34 = vld [vmem:[#allocation5 + $0x178] sm:$0xff] }
 0x38a   : > { %3086 = vmatpush3.bf16.msra.mxu0 %v3085_v37  ;;  %3112 = vmatprep.subr.bf16.mxu1 %v3083_v51  ;;  %v3109_v51 = vpack.c.bf16 %v1748_v34, %v1747_v56 }
 0x38b   : > { %2878 = vmatmul.mubr.f32.gmra.mrb[22].mxu0 %v4281_v47  ;;  %3088 = vmatprep.subr.bf16.mxu0 %v3087_v18  ;;  %v3095_v47 = vpack.c.bf16 %v1758_v48, %v1757_v63 }
 0x38c   : > { %2880 = vmatprep.mubr.f32.mxu0 %v4284_v28  ;;  %1842 = vmatmul.mubr.f32.gmra.mrb[34].mxu1 %v4342_v57  ;;  %v1760_v28 = vld [vmem:[#allocation5 + $0x1d8] sm:$0xff] }
 0x38d   : > { %3120 = vmatpush3.bf16.msra.mxu1 %v3085_v37  ;;  %v3099_v7 = vpack.c.bf16 %v1760_v28, %v1759_v58  ;;  %v4436_v37 = vld [vmem:[%s3681_s22 + $0x68] sm:$0xff] }
 0x38e   : > { %3090 = vmatpush3.bf16.msra.mxu0 %v3089_v16  ;;  %3113 = vmatprep.subr.bf16.mxu1 %v3087_v18  ;;  %v4441_v18 = vld [vmem:[%s3681_s22 + $0x70] sm:$0xff] }
 0x38f   : > { %2881 = vmatmul.mubr.f32.gmra.mrb[24].mxu0 %v4289_v55  ;;  %3092 = vmatprep.subr.bf16.mxu0 %v3091_v38  ;;  %v1761_v55 = vld [vmem:[#allocation5 + $0x1e0] sm:$0xff] }
 0x390   : > { %2883 = vmatprep.mubr.f32.mxu0 %v4292_v61  ;;  %v3103_v61 = vpack.c.bf16 %v1762_v23, %v1761_v55 }
 0x391   : > { %3121 = vmatpush3.bf16.msra.mxu1 %v3089_v16  ;;  %v1669_v16 = vmul.f32 %v4335_v31, %v4329_v42 }
 0x392   : > { %3094 = vmatpush3.bf16.msra.mxu0 %v3093_v21  ;;  %3114 = vmatprep.subr.bf16.mxu1 %v3091_v38 }
 0x393   : > { %2884 = vmatmul.mubr.f32.gmra.mrb[26].mxu0 %v4297_v9  ;;  %3096 = vmatprep.subr.bf16.mxu0 %v3095_v47  ;;  %v3105_v9 = vpack.c.bf16 %v1746_v8, %v1745_v4 }
 0x394   : > { %2886 = vmatprep.mubr.f32.mxu0 %v4300_v14 }
 0x395   : > { %3122 = vmatpush3.bf16.msra.mxu1 %v3093_v21  ;;  %v1670_v21 = vmul.f32 %v4342_v57, %v4327_v17 }
 0x396   : > { %3098 = vmatpush3.bf16.msra.mxu0 %v3097_v53  ;;  %3115 = vmatprep.subr.bf16.mxu1 %v3095_v47 }
 0x397   : > { %2887 = vmatmul.mubr.f32.gmra.mrb[28].mxu0 %v4305_v43  ;;  %3100 = vmatprep.subr.bf16.mxu0 %v3099_v7 }
 0x398   : > { %2889 = vmatprep.mubr.f32.mxu0 %v4308_v54  ;;  %v4360_v54 = vld [vmem:[%s3681_s22 + $0x10] sm:$0xff] }
 0x399   : > { %3123 = vmatpush3.bf16.msra.mxu1 %v3097_v53 }
 0x39a   : > { %3102 = vmatpush3.bf16.msra.mxu0 %v3101_v27  ;;  %3116 = vmatprep.subr.bf16.mxu1 %v3099_v7 }
 0x39b   : > { %2890 = vmatmul.mubr.f32.gmra.mrb[30].mxu0 %v4313_v40  ;;  %3104 = vmatprep.subr.bf16.mxu0 %v3103_v61 }
 0x39c   : > { %2892 = vmatprep.mubr.f32.mxu0 %v4316_v22 }
 0x39d   : > { %3124 = vmatpush3.bf16.msra.mxu1 %v3101_v27 }
 0x39e   : > { %3106 = vmatpush3.bf16.msra.mxu0 %v3105_v9  ;;  %3117 = vmatprep.subr.bf16.mxu1 %v3103_v61 }
 0x39f   : > { %2893 = vmatmul.mubr.f32.gmra.mrb[32].mxu0 %v4321_v46  ;;  %v4369_v46 = vld [vmem:[%s3681_s22 + $0x18] sm:$0xff]  ;;  %3108 = vmatprep.subr.bf16.mxu0 %v3107_v30 }
 0x3a1   : > { %3125 = vmatpush3.bf16.msra.mxu1 %v3105_v9 }
 0x3a2   : > { %3118 = vmatprep.subr.bf16.mxu1 %v3107_v30  ;;  %3110 = vmatpush3.bf16.msra.mxu0 %v3109_v51 }
 0x3a5   : > { %3126 = vmatpush3.bf16.msra.mxu1 %v3109_v51 }
 0x3bd   : > { %v4354_v14 = vpop.f32.mrb[4].mxu0 }
 0x3be   : > { %v4356_v43 = vpop.f32.mrb[5].mxu0  ;;  %v1672_v17 = vmul.f32 %v4369_v46, %v4354_v14 }
 0x3bf   : > { %1846 = vmatprep.mubr.f32.mxu1 %v4356_v43  ;;  %v1671_v28 = vmul.f32 %v4360_v54, %v4356_v43 }
 0x3c0   : > { %1847 = vmatmul.mubr.f32.gmra.mrb[36].mxu1 %v4360_v54 }
 0x3c1   : > { %v4363_v40 = vpop.f32.mrb[6].mxu0  ;;  %1851 = vmatprep.mubr.f32.mxu1 %v4354_v14 }
 0x3c2   : > { %v4366_v22 = vpop.f32.mrb[7].mxu0  ;;  %v1674_v9 = vmul.f32 %v4387_v39, %v4363_v40 }
 0x3c3   : > { %v1673_v27 = vmul.f32 %v4378_v32, %v4366_v22 }
 0x3c4   : > { %1852 = vmatmul.mubr.f32.gmra.mrb[38].mxu1 %v4369_v46 }
 0x3c5   : > { %v4372_v24 = vpop.f32.mrb[8].mxu0  ;;  %1856 = vmatprep.mubr.f32.mxu1 %v4366_v22 }
 0x3c6   : > { %v4375_v20 = vpop.f32.mrb[9].mxu0 }
 0x3c7   : > { %v1675_v5 = vmul.f32 %v4396_v3, %v4375_v20 }
 0x3c8   : > { %1857 = vmatmul.mubr.f32.gmra.mrb[40].mxu1 %v4378_v32 }
 0x3c9   : > { %v4381_v1 = vpop.f32.mrb[10].mxu0  ;;  %1861 = vmatprep.mubr.f32.mxu1 %v4363_v40  ;;  %v1676_v40 = vmul.f32 %v4405_v12, %v4372_v24 }
 0x3ca   : > { %v4384_v29 = vpop.f32.mrb[11].mxu0 }
 0x3cc   : > { %1862 = vmatmul.mubr.f32.gmra.mrb[42].mxu1 %v4387_v39 }
 0x3cd   : > { %v4390_v50 = vpop.f32.mrb[12].mxu0  ;;  %1866 = vmatprep.mubr.f32.mxu1 %v4375_v20 }
 0x3ce   : > { %v4393_v19 = vpop.f32.mrb[13].mxu0 }
 0x3d0   : > { %1867 = vmatmul.mubr.f32.gmra.mrb[44].mxu1 %v4396_v3 }
 0x3d1   : > { %v4399_v41 = vpop.f32.mrb[14].mxu0  ;;  %1871 = vmatprep.mubr.f32.mxu1 %v4372_v24 }
 0x3d2   : > { %v4402_v52 = vpop.f32.mrb[15].mxu0 }
 0x3d3   : > { %v1681_v22 = vmul.f32 %v3308_v25, %v4402_v52 }
 0x3d4   : > { %1872 = vmatmul.mubr.f32.gmra.mrb[46].mxu1 %v4405_v12 }
 0x3d5   : > { %v4408_v10 = vpop.f32.mrb[16].mxu0  ;;  %1876 = vmatprep.mubr.f32.mxu1 %v4384_v29 }
 0x3d6   : > { %v4411_v49 = vpop.f32.mrb[17].mxu0 }
 0x3d7   : > { %v1683_v34 = vmul.f32 %v4441_v18, %v4411_v49 }
 0x3d8   : > { %1877 = vmatmul.mubr.f32.gmra.mrb[48].mxu1 %v4414_v60 }
 0x3d9   : > { %1881 = vmatprep.mubr.f32.mxu1 %v4381_v1 }
 0x3dc   : > { %1882 = vmatmul.mubr.f32.gmra.mrb[50].mxu1 %v4419_v11 }
 0x3dd   : > { %1886 = vmatprep.mubr.f32.mxu1 %v4393_v19 }
 0x3e0   : > { %1887 = vmatmul.mubr.f32.gmra.mrb[52].mxu1 %v4424_v62 }
 0x3e1   : > { %1891 = vmatprep.mubr.f32.mxu1 %v4390_v50 }
 0x3e4   : > { %1892 = vmatmul.mubr.f32.gmra.mrb[54].mxu1 %v4429_v6 }
 0x3e5   : > { %1896 = vmatprep.mubr.f32.mxu1 %v4402_v52  ;;  %v1677_v52 = vmul.f32 %v4414_v60, %v4384_v29  ;;  %v1679_v29 = vmul.f32 %v4424_v62, %v4393_v19 }
 0x3e8   : > { %1897 = vmatmul.mubr.f32.gmra.mrb[56].mxu1 %v3308_v25 }
 0x3e9   : > { %1901 = vmatprep.mubr.f32.mxu1 %v4399_v41 }
 0x3ec   : > { %1902 = vmatmul.mubr.f32.gmra.mrb[58].mxu1 %v4436_v37 }
 0x3ed   : > { %1906 = vmatprep.mubr.f32.mxu1 %v4411_v49 }
 0x3f0   : > { %1907 = vmatmul.mubr.f32.gmra.mrb[60].mxu1 %v4441_v18 }
 0x3f1   : > { %1911 = vmatprep.mubr.f32.mxu1 %v4408_v10 }
 0x3f4   : > { %1912 = vmatmul.mubr.f32.gmra.mrb[62].mxu1 %v4446_v44 }
 0x456   : > { %v2873_v33 = vpop.f32.mrb[18].mxu0 }
 0x457   : > { %v1590_v59 = vpop.f32.mrb[19].mxu0  ;;  %v1686_v38 = vmul.f32 %v4342_v57, %v2873_v33 }
 0x458   : > { %v1685_v26 = vmul.f32 %v4335_v31, %v1590_v59 }
 0x45a   : > { %v2876_v45 = vpop.f32.mrb[20].mxu0  ;;  %1981 = vmatprep.mubr.f32.mxu0 %v1685_v26 }
 0x45b   : > { %v1600_v13 = vpop.f32.mrb[21].mxu0  ;;  %1982 = vmatmul.mubr.f32.vlgmr.msra.gmra.mrb[34].mxu0 %v1669_v16  ;;  %v2508_v63 = vpop.f32.mrb[32].mxu1  ;;  %v1688_v7 = vmul.f32 %v4369_v46, %v2876_v45 }
 0x45c   : > { %1986 = vmatprep.mubr.f32.mxu0 %v1686_v38  ;;  %v2509_v48 = vpop.f32.mrb[33].mxu1  ;;  %v1687_v15 = vmul.f32 %v4360_v54, %v1600_v13 }
 0x45d   : > { %v4455_v47 = vadd.f32 %v2509_v48, %v2508_v63 }
 0x45e   : > { %v2879_v35 = vpop.f32.mrb[22].mxu0 }
 0x45f   : > { %v1610_v58 = vpop.f32.mrb[23].mxu0  ;;  %1987 = vmatmul.mubr.f32.gmra.mrb[36].mxu0 %v1670_v21  ;;  %v2511_v42 = vpop.f32.mrb[34].mxu1  ;;  %v1690_v61 = vmul.f32 %v4387_v39, %v2879_v35  ;;  %v1682_v39 = vmul.f32 %v4436_v37, %v4399_v41  ;;  %v1678_v41 = vmul.f32 %v4419_v11, %v4381_v1 }
 0x460   : > { %1991 = vmatprep.mubr.f32.mxu0 %v1687_v15  ;;  %v2512_v31 = vpop.f32.mrb[35].mxu1  ;;  %v1689_v57 = vmul.f32 %v4378_v32, %v1610_v58 }
 0x461   : > { %v4460_v53 = vadd.f32 %v2512_v31, %v2511_v42 }
 0x462   : > { %v2882_v36 = vpop.f32.mrb[24].mxu0 }
 0x463   : > { %v1620_v2 = vpop.f32.mrb[25].mxu0  ;;  %1992 = vmatmul.mubr.f32.gmra.mrb[38].mxu0 %v1671_v28  ;;  %v1692_v32 = vmul.f32 %v4405_v12, %v2882_v36  ;;  %v1684_v12 = vmul.f32 %v4446_v44, %v4408_v10 }
 0x464   : > { %1996 = vmatprep.mubr.f32.mxu0 %v1688_v7  ;;  %v1691_v14 = vmul.f32 %v4396_v3, %v1620_v2 }
 0x466   : > { %v2885_v55 = vpop.f32.mrb[26].mxu0 }
 0x467   : > { %v1630_v23 = vpop.f32.mrb[27].mxu0  ;;  %1997 = vmatmul.mubr.f32.gmra.mrb[40].mxu0 %v1672_v17  ;;  %v1694_v51 = vmul.f32 %v4419_v11, %v2885_v55 }
 0x468   : > { %2001 = vmatprep.mubr.f32.mxu0 %v1689_v57  ;;  %v1693_v20 = vmul.f32 %v4414_v60, %v1630_v23  ;;  %v1680_v60 = vmul.f32 %v4429_v6, %v4390_v50 }
 0x46a   : > { %v2888_v4 = vpop.f32.mrb[28].mxu0 }
 0x46b   : > { %v1640_v8 = vpop.f32.mrb[29].mxu0  ;;  %2002 = vmatmul.mubr.f32.gmra.mrb[42].mxu0 %v1673_v27  ;;  %v1696_v49 = vmul.f32 %v4429_v6, %v2888_v4 }
 0x46c   : > { %2006 = vmatprep.mubr.f32.mxu0 %v1690_v61 }
 0x46e   : > { %v2891_v43 = vpop.f32.mrb[30].mxu0 }
 0x46f   : > { %v1650_v54 = vpop.f32.mrb[31].mxu0  ;;  %2007 = vmatmul.mubr.f32.gmra.mrb[44].mxu0 %v1674_v9  ;;  %v1698_v0 = vmul.f32 %v4436_v37, %v2891_v43 }
 0x470   : > { %v1697_v46 = vmul.f32 %v3308_v25, %v1650_v54  ;;  %2011 = vmatprep.mubr.f32.mxu0 %v1691_v14  ;;  %v1695_v25 = vmul.f32 %v4424_v62, %v1640_v8 }
 0x472   : > { %v2894_v56 = vpop.f32.mrb[32].mxu0  ;;  %2041 = vmatprep.mubr.f32.mxu1 %v1697_v46 }
 0x473   : > { %v1660_v30 = vpop.f32.mrb[33].mxu0  ;;  %2012 = vmatmul.mubr.f32.gmra.mrb[46].mxu0 %v1675_v5  ;;  %2042 = vmatmul.mubr.f32.vlgmr.msra.gmra.mrb[64].mxu1 %v1681_v22  ;;  %v1700_v24 = vmul.f32 %v4446_v44, %v2894_v56  ;;  %v2070_v5 = vpop.permute.xlu1 %2069  ;;  %v4530_v56 = vld [vmem:[%s4655_s8] ss:$0 sm:$0xff] }
 0x474   : > { %2016 = vmatprep.mubr.f32.mxu0 %v1692_v32  ;;  %2046 = vmatprep.mubr.f32.mxu1 %v1698_v0  ;;  %v1699_v3 = vmul.f32 %v4441_v18, %v1660_v30  ;;  %v2065_v22 = vpop.permute.xlu0 %2064 }
 0x477   : > { %2017 = vmatmul.mubr.f32.gmra.mrb[48].mxu0 %v1676_v40  ;;  %2047 = vmatmul.mubr.f32.gmra.mrb[66].mxu1 %v1682_v39  ;;  %v2075_v32 = vpop.permute.xlu1 %2074  ;;  %v1839_v39 = vadd.f32 %v4455_v47, %v4530_v56 }
 0x478   : > { %2021 = vmatprep.mubr.f32.mxu0 %v1693_v20  ;;  %2051 = vmatprep.mubr.f32.mxu1 %v1699_v3  ;;  %v2080_v0 = vpop.permute.xlu0 %2079 }
 0x47b   : > { %2022 = vmatmul.mubr.f32.gmra.mrb[50].mxu0 %v1677_v52  ;;  %2052 = vmatmul.mubr.f32.gmra.mrb[68].mxu1 %v1683_v34  ;;  %v2085_v3 = vpop.permute.xlu1 %2084 }
 0x47c   : > { %2026 = vmatprep.mubr.f32.mxu0 %v1694_v51  ;;  %2056 = vmatprep.mubr.f32.mxu1 %v1700_v24  ;;  %v2090_v51 = vpop.permute.xlu0 %2089 }
 0x47f   : > { %2027 = vmatmul.mubr.f32.gmra.mrb[52].mxu0 %v1678_v41  ;;  %2057 = vmatmul.mubr.f32.gmra.mrb[70].mxu1 %v1684_v12  ;;  %v1844_v41 = vadd.f32 %v4460_v53, %v4530_v56 }
 0x480   : > { %2031 = vmatprep.mubr.f32.mxu0 %v1695_v25 }
 0x483   : > { %2032 = vmatmul.mubr.f32.gmra.mrb[54].mxu0 %v1679_v29 }
 0x484   : > { %2036 = vmatprep.mubr.f32.mxu0 %v1696_v49  ;;  %v2095_v49 = vpop.permute.xlu1 %2094 }
 0x487   : > { %2037 = vmatmul.mubr.f32.gmra.mrb[56].mxu0 %v1680_v60 }
 0x493   : > { %v2514_v1 = vpop.f32.mrb[36].mxu1 }
 0x494   : > { %v2515_v11 = vpop.f32.mrb[37].mxu1 }
 0x495   : > { %v4499_v37 = vadd.f32 %v2515_v11, %v2514_v1 }
 0x497   : > { %v2517_v10 = vpop.f32.mrb[38].mxu1  ;;  %v1849_v1 = vadd.f32 %v4499_v37, %v4530_v56 }
 0x498   : > { %v2518_v18 = vpop.f32.mrb[39].mxu1 }
 0x499   : > { %v4501_v44 = vadd.f32 %v2518_v18, %v2517_v10  ;;  %v2100_v18 = vpop.permute.xlu0 %2099 }
 0x49b   : > { %v2520_v33 = vpop.f32.mrb[40].mxu1 }
 0x49c   : > { %v2521_v59 = vpop.f32.mrb[41].mxu1 }
 0x49d   : > { %v4503_v26 = vadd.f32 %v2521_v59, %v2520_v33  ;;  %v4549_v37 = vpop.permute.xlu0 %2109 }
 0x49f   : > { %v2523_v19 = vpop.f32.mrb[42].mxu1 }
 0x4a0   : > { %v2524_v62 = vpop.f32.mrb[43].mxu1 }
 0x4a1   : > { %v4505_v16 = vadd.f32 %v2524_v62, %v2523_v19  ;;  %v1854_v19 = vadd.f32 %v4501_v44, %v4530_v56 }
 0x4a3   : > { %v2526_v38 = vpop.f32.mrb[44].mxu1 }
 0x4a4   : > { %v2527_v45 = vpop.f32.mrb[45].mxu1 }
 0x4a5   : > { %v4507_v50 = vadd.f32 %v2527_v45, %v2526_v38  ;;  %v4546_v45 = vpop.permute.xlu1 %2104 }
 0x4a7   : > { %v2529_v6 = vpop.f32.mrb[46].mxu1 }
 0x4a8   : > { %v2530_v13 = vpop.f32.mrb[47].mxu1 }
 0x4a9   : > { %v4509_v63 = vadd.f32 %v2530_v13, %v2529_v6  ;;  %v4554_v44 = vpop.permute.xlu1 %2114 }
 0x4ab   : > { %v2532_v48 = vpop.f32.mrb[48].mxu1 }
 0x4ac   : > { %v2533_v21 = vpop.f32.mrb[49].mxu1 }
 0x4ad   : > { %v4511_v15 = vadd.f32 %v2533_v21, %v2532_v48  ;;  %v1859_v21 = vadd.f32 %v4503_v26, %v4530_v56 }
 0x4af   : > { %v2535_v35 = vpop.f32.mrb[50].mxu1 }
 0x4b0   : > { %v2536_v58 = vpop.f32.mrb[51].mxu1 }
 0x4b1   : > { %v4513_v42 = vadd.f32 %v2536_v58, %v2535_v35 }
 0x4b3   : > { %v2538_v31 = vpop.f32.mrb[52].mxu1 }
 0x4b4   : > { %v2539_v28 = vpop.f32.mrb[53].mxu1 }
 0x4b5   : > { %v4515_v7 = vadd.f32 %v2539_v28, %v2538_v31 }
 0x4b7   : > { %v2541_v36 = vpop.f32.mrb[54].mxu1 }
 0x4b8   : > { %v2542_v2 = vpop.f32.mrb[55].mxu1 }
 0x4b9   : > { %v4517_v17 = vadd.f32 %v2542_v2, %v2541_v36  ;;  %v1864_v2 = vadd.f32 %v4505_v16, %v4530_v56 }
 0x4bb   : > { %v2544_v57 = vpop.f32.mrb[56].mxu1 }
 0x4bc   : > { %v2545_v55 = vpop.f32.mrb[57].mxu1 }
 0x4bd   : > { %v4519_v23 = vadd.f32 %v2545_v55, %v2544_v57 }
 0x4bf   : > { %v2547_v27 = vpop.f32.mrb[58].mxu1 }
 0x4c0   : > { %v2548_v61 = vpop.f32.mrb[59].mxu1 }
 0x4c1   : > { %v4521_v4 = vadd.f32 %v2548_v61, %v2547_v27  ;;  %v4558_v27 = vpop.permute.xlu0 %2119 }
 0x4c3   : > { %v2550_v8 = vpop.f32.mrb[60].mxu1 }
 0x4c4   : > { %v2551_v9 = vpop.f32.mrb[61].mxu1 }
 0x4c5   : > { %v4523_v14 = vadd.f32 %v2551_v9, %v2550_v8  ;;  %v1869_v9 = vadd.f32 %v4507_v50, %v4530_v56  ;;  %v1904_v50 = vadd.f32 %v4521_v4, %v4530_v56 }
 0x4c7   : > { %v2553_v43 = vpop.f32.mrb[62].mxu1  ;;  %v1909_v4 = vadd.f32 %v4523_v14, %v4530_v56 }
 0x4c8   : > { %v2554_v54 = vpop.f32.mrb[63].mxu1 }
 0x4c9   : > { %v4525_v46 = vadd.f32 %v2554_v54, %v2553_v43 }
 0x4cb   : > { %v1914_v14 = vadd.f32 %v4525_v46, %v4530_v56  ;;  %v1889_v46 = vadd.f32 %v4515_v7, %v4530_v56 }
 0x52e   : > { %v2588_v30 = vpop.f32.mrb[34].mxu0 }
 0x52f   : > { %v2589_v40 = vpop.f32.mrb[35].mxu0 }
 0x530   : > { %v2590_v20 = vadd.f32 %v2589_v40, %v2588_v30 }
 0x532   : > { %v1984_v52 = vadd.f32 %v2590_v20, %v1839_v39  ;;  %v2591_v34 = vpop.f32.mrb[36].mxu0 }
 0x533   : > { %v2592_v24 = vpop.f32.mrb[37].mxu0 }
 0x534   : > { %v2142_v12 = vmul.f32 %v2065_v22, %v1984_v52  ;;  %v2593_v25 = vadd.f32 %v2592_v24, %v2591_v34 }
 0x536   : > { %2158 = vst [vmem:[%s4538_s21] sm:$0xff] %v2142_v12  ;;  %v1989_v29 = vadd.f32 %v2593_v25, %v1844_v41  ;;  %v2594_v47 = vpop.f32.mrb[38].mxu0  ;;  %v2130_v12 = vpop.permute.xlu0 %2129 }
 0x537   : > { %v2595_v60 = vpop.f32.mrb[39].mxu0 }
 0x538   : > { %v2143_v11 = vmul.f32 %v2070_v5, %v1989_v29  ;;  %v2596_v10 = vadd.f32 %v2595_v60, %v2594_v47  ;;  %v1899_v5 = vadd.f32 %v4519_v23, %v4530_v56 }
 0x53a   : > { %2159 = vst [vmem:[%s4538_s21 + $0x8] sm:$0xff] %v2143_v11  ;;  %v1994_v53 = vadd.f32 %v2596_v10, %v1849_v1  ;;  %v2597_v33 = vpop.f32.mrb[40].mxu0 }
 0x53b   : > { %v2598_v59 = vpop.f32.mrb[41].mxu0 }
 0x53c   : > { %v2144_v62 = vmul.f32 %v2075_v32, %v1994_v53  ;;  %v2599_v38 = vadd.f32 %v2598_v59, %v2597_v33 }
 0x53e   : > { %2160 = vst [vmem:[%s4538_s21 + $0x10] sm:$0xff] %v2144_v62  ;;  %v1999_v6 = vadd.f32 %v2599_v38, %v1854_v19  ;;  %v2600_v13 = vpop.f32.mrb[42].mxu0 }
 0x53f   : > { %v2601_v48 = vpop.f32.mrb[43].mxu0 }
 0x540   : > { %v2145_v35 = vmul.f32 %v2080_v0, %v1999_v6  ;;  %v2602_v58 = vadd.f32 %v2601_v48, %v2600_v13  ;;  %v2125_v0 = vpop.permute.xlu1 %2124 }
 0x542   : > { %2161 = vst [vmem:[%s4538_s21 + $0x18] sm:$0xff] %v2145_v35  ;;  %v2004_v31 = vadd.f32 %v2602_v58, %v1859_v21  ;;  %v2603_v28 = vpop.f32.mrb[44].mxu0 }
 0x543   : > { %v2604_v36 = vpop.f32.mrb[45].mxu0 }
 0x544   : > { %v2146_v57 = vmul.f32 %v2085_v3, %v2004_v31  ;;  %v2605_v55 = vadd.f32 %v2604_v36, %v2603_v28  ;;  %v1874_v3 = vadd.f32 %v4509_v63, %v4530_v56  ;;  %v1879_v63 = vadd.f32 %v4511_v15, %v4530_v56  ;;  %v2135_v59 = vpop.permute.xlu1 %2134 }
 0x545   : > { %v1884_v15 = vadd.f32 %v4513_v42, %v4530_v56  ;;  %v2140_v42 = vpop.permute.xlu0 %2139 }
 0x546   : > { %2162 = vst [vmem:[%s4538_s21 + $0x20] sm:$0xff] %v2146_v57  ;;  %v2009_v61 = vadd.f32 %v2605_v55, %v1864_v2  ;;  %v2606_v8 = vpop.f32.mrb[46].mxu0  ;;  %v2624_v26 = vpop.f32.mrb[64].mxu1 }
 0x547   : > { %v2607_v43 = vpop.f32.mrb[47].mxu0  ;;  %v2625_v54 = vpop.f32.mrb[65].mxu1 }
 0x548   : > { %v2147_v22 = vmul.f32 %v2090_v51, %v2009_v61  ;;  %v2608_v32 = vadd.f32 %v2607_v43, %v2606_v8  ;;  %v2626_v16 = vadd.f32 %v2625_v54, %v2624_v26 }
 0x54a   : > { %2163 = vst [vmem:[%s4538_s21 + $0x28] sm:$0xff] %v2147_v22  ;;  %v2014_v30 = vadd.f32 %v2608_v32, %v1869_v9  ;;  %v2044_v40 = vadd.f32 %v2626_v16, %v1899_v5  ;;  %v2609_v39 = vpop.f32.mrb[48].mxu0  ;;  %v2627_v20 = vpop.f32.mrb[66].mxu1  ;;  %v1894_v9 = vadd.f32 %v4517_v17, %v4530_v56 }
 0x54b   : > { %v2610_v52 = vpop.f32.mrb[49].mxu0  ;;  %v2628_v34 = vpop.f32.mrb[67].mxu1 }
 0x54c   : > { %v2148_v23 = vmul.f32 %v2095_v49, %v2014_v30  ;;  %v2154_v51 = vmul.f32 %v2125_v0, %v2044_v40  ;;  %v2611_v24 = vadd.f32 %v2610_v52, %v2609_v39  ;;  %v2629_v41 = vadd.f32 %v2628_v34, %v2627_v20 }
 0x54e   : > { %2164 = vst [vmem:[%s4538_s21 + $0x30] sm:$0xff] %v2148_v23  ;;  %2170 = vst [vmem:[%s4538_s21 + $0x60] sm:$0xff] %v2154_v51  ;;  %v2019_v25 = vadd.f32 %v2611_v24, %v1874_v3  ;;  %v2049_v29 = vadd.f32 %v2629_v41, %v1904_v50  ;;  %v2612_v47 = vpop.f32.mrb[50].mxu0  ;;  %v2630_v60 = vpop.f32.mrb[68].mxu1 }
 0x54f   : > { %v2613_v1 = vpop.f32.mrb[51].mxu0  ;;  %v2631_v49 = vpop.f32.mrb[69].mxu1 }
 0x550   : > { %v2149_v11 = vmul.f32 %v2100_v18, %v2019_v25  ;;  %v2155_v10 = vmul.f32 %v2130_v12, %v2049_v29  ;;  %v2614_v53 = vadd.f32 %v2613_v1, %v2612_v47  ;;  %v2632_v33 = vadd.f32 %v2631_v49, %v2630_v60 }
 0x552   : > { %2165 = vst [vmem:[%s4538_s21 + $0x38] sm:$0xff] %v2149_v11  ;;  %2171 = vst [vmem:[%s4538_s21 + $0x68] sm:$0xff] %v2155_v10  ;;  %v2024_v19 = vadd.f32 %v2614_v53, %v1879_v63  ;;  %v2054_v62 = vadd.f32 %v2632_v33, %v1909_v4  ;;  %v2615_v38 = vpop.f32.mrb[52].mxu0  ;;  %v2633_v6 = vpop.f32.mrb[70].mxu1 }
 0x553   : > { %v2616_v13 = vpop.f32.mrb[53].mxu0  ;;  %v2634_v18 = vpop.f32.mrb[71].mxu1 }
 0x554   : > { %v2150_v48 = vmul.f32 %v4546_v45, %v2024_v19  ;;  %v2156_v21 = vmul.f32 %v2135_v59, %v2054_v62  ;;  %v2617_v35 = vadd.f32 %v2616_v13, %v2615_v38  ;;  %v2635_v58 = vadd.f32 %v2634_v18, %v2633_v6 }
 0x556   : > { %2166 = vst [vmem:[%s4538_s21 + $0x40] sm:$0xff] %v2150_v48  ;;  %2172 = vst [vmem:[%s4538_s21 + $0x70] sm:$0xff] %v2156_v21  ;;  %v2029_v31 = vadd.f32 %v2617_v35, %v1884_v15  ;;  %v2059_v28 = vadd.f32 %v2635_v58, %v1914_v14  ;;  %v2618_v36 = vpop.f32.mrb[54].mxu0 }
 0x557   : > { %v2619_v2 = vpop.f32.mrb[55].mxu0 }
 0x558   : > { %v2151_v57 = vmul.f32 %v4549_v37, %v2029_v31  ;;  %v2157_v45 = vmul.f32 %v2140_v42, %v2059_v28  ;;  %v2620_v55 = vadd.f32 %v2619_v2, %v2618_v36 }
 0x55a   : > { %2167 = vst [vmem:[%s4538_s21 + $0x48] sm:$0xff] %v2151_v57  ;;  %2173 = vst [vmem:[%s4538_s21 + $0x78] sm:$0xff] %v2157_v45  ;;  %v2034_v61 = vadd.f32 %v2620_v55, %v1889_v46  ;;  %v2621_v8 = vpop.f32.mrb[56].mxu0 }
 0x55b   : > { %v2622_v26 = vpop.f32.mrb[57].mxu0 }
 0x55c   : > { %v2152_v43 = vmul.f32 %v4554_v44, %v2034_v61  ;;  %v2623_v54 = vadd.f32 %v2622_v26, %v2621_v8 }
 0x55e   : > { %2168 = vst [vmem:[%s4538_s21 + $0x50] sm:$0xff] %v2152_v43  ;;  %v2039_v7 = vadd.f32 %v2623_v54, %v1894_v9 }
 0x560   : > { %v2153_v37 = vmul.f32 %v4558_v27, %v2039_v7 }
 0x562   : > { %2169 = vst [vmem:[%s4538_s21 + $0x58] sm:$0xff] %v2153_v37 }
 0x563   : > { %3383 = shalt.err (!%p3380_p9)
}
 0x564   : > { %s3384_s16 = scalar_lea.hbm %s4599_s25, 2048  ;;  %s3388_s21 = scalar_lea.hbm %s4656_s9, 4096 }
 0x565   : > { %p3385_p1 = scmp.ne.s32.totalorder %s4599_s25, %s3384_s16  ;;  %p3389_p11 = scmp.lt.u32.totalorder %s4599_s25, %s4656_s9 }
 0x566   : > { %p3390_p2 = scmp.lt.u32.totalorder %s3388_s21, %s3384_s16  ;;  %p3392_p6 = scmp.lt.u32.totalorder %s3384_s16, %s4599_s25 }
 0x567   : > { %p3386_p0 = pnand %p3385_p1, %p3597_p12 }
 0x568   : > { %p3391_p4 = por %p3390_p2, %p3389_p11 }
 0x569   : > { %p3387_p5 = pneg %p3386_p0 }
 0x56a   : > { %p3393_p8 = por %p3392_p6, %p3391_p4 }
 0x56c   : > { %p3394_p10 = pnand %p3393_p8, %p3387_p5 }
 0x56e   : > { %3397 = shalt.err (!%p3394_p10)
}
 0x56f   : > { %s3451_s20 = smov 128   ;;  %s3452_s17 = smov 8  }
 0x570   : > { %3133 = dma.vmem_to_hbm [thread:$0]  (%p3597_p12), %s4601_s18, 2048, %s4599_s25, %s2175_s23, %s3451_s20, %s3451_s20, %s3452_s17  }
 0x571 PF: > { %s4720_s13 = sld [smem:[#allocation11_spill]]  ;;  %s2203_s26 = sand.u32 1, %s3428_s30  }
 0x572   : > { %p4722_p3 = scmp.ge.s32.totalorder %s3440_s12, 2  ;;  %s2204_s27 = scalar_lea.sflag [#allocation4], %s2203_s26 }
 0x577   : > { %p4721_p13 = scmp.ne.s32.totalorder %s4720_s13, 0 }
 0x579   : > { %p3144_p7 = pnand %p4722_p3, %p4721_p13 }
 0x57b   : > { %3423 = dma.done.wait (!%p3144_p7), %s2204_s27, 2048  }
 0x57c   : > { %3425 = vsyncadd (!%p3144_p7), %s2204_s27, 4294965248  ;;  %s4723_s12 = sld [smem:[#allocation12_spill]]  ;;  %s4724_s30 = smov %s3432_s10 }
 0x57d   : > { %s4725_s10 = smov %s3436_s11  ;;  %s4726_s11 = smov %s3593_s28 }
 0x582   : > { %p23_p9 = scmp.ge.s32.totalorder %s4723_s12, 4  }
 0x584   :  { %25 = sbr.rel (!%p23_p9) target bundleno = 6 (0x6), region = 114 }
 0x58b   :  { %2209 = vsyncpa [#allocation3], 1 }
 0x58c   :  { %2211 = vsyncpa [#allocation3 + $0x1], 1 }
 0x58d   :  { %2212 = vsyncpa [#allocation6], 1 }
 0x58e   :  { %2213 = vsyncpa [#allocation4], 1 }
 0x58f   :  { %2215 = vsyncpa [#allocation4 + $0x1], 1 }

</bundles_post_ra>
